<compile_context>
chip_gen: v5e
topology: v5e:2x2
jax: 0.10.0
libtpu: 0.0.40
codegen_flags: <defaults>
</compile_context>

<pallas_src>
import functools

import jax
import jax.numpy as jnp
import numpy as np
from jax import lax
from jax.experimental import pallas as pl
from jax.experimental.pallas import tpu as pltpu

NUM_CLASSES = 17          # F.one_hot(..., num_classes=17) in the reference
_BIG = 1e9                # row/col masking value inside the greedy assignment
_MAX_HW_TILE = 2048       # sized for v7x (64 MiB VMEM) with bf16 mask streams


def _pick_hw_tile(hw):
    for t in (_MAX_HW_TILE, 1024, 512, 256, 128):
        if hw % t == 0:
            return t
    return hw             # small / odd HW: single full-width block


# ------------------------------------------------------------------ kernel
def _match_loss_kernel(pm_ref, gm_ref, lg_ref, oh_ref, sc_ref, o_ref, acc_ref,
                       *, hw_total, greedy_unroll):
    hw_step = pl.program_id(1)
    n_hw = pl.num_programs(1)

    @pl.when(hw_step == 0)
    def _init():
        acc_ref[...] = jnp.zeros_like(acc_ref)

    # ---- streamed HW tile: ONE stacked MXU matmul for all HW-contracted stats
    p = pm_ref[0].astype(jnp.float32)          # [Q, T] pred mask probs (bf16 in HBM)
    g = gm_ref[0].astype(jnp.float32)          # [G, T] gt masks (binary 0/1)
    Q, T = p.shape
    G = g.shape[0]

    log_p = jnp.maximum(jnp.log(p), -100.0)         # torch BCELoss clamps at -100
    log_1mp = jnp.maximum(jnp.log(1.0 - p), -100.0)
    pb = (p >= 0.5).astype(jnp.float32)
    ones_r = jnp.ones((1, T), jnp.float32)

    # LHS [p ; log_p ; log_1mp ; pb ; ones] (4Q+1, T), RHS [g ; ones] (G+1, T):
    # one MXU pass yields inter|psum, log_p@g, log_1mp@g|s_1mp, inter_b|pbsum, gsum.
    lhs = jnp.concatenate([p, log_p, log_1mp, pb, ones_r], axis=0)
    rhs = jnp.concatenate([g, ones_r], axis=0)
    dn = (((1,), (1,)), ((), ()))
    acc_ref[...] += lax.dot_general(lhs, rhs, dn,
                                    preferred_element_type=jnp.float32)

    # ---- final HW step: class terms, greedy assignment, loss reduction --------
    @pl.when(hw_step == n_hw - 1)
    def _finalize():
        stats = acc_ref[...]
        inter = stats[0:Q, 0:G]
        psum = stats[0:Q, G:G + 1]
        lp_g = stats[Q:2 * Q, 0:G]
        l1mp_g = stats[2 * Q:3 * Q, 0:G]
        s_1mp = stats[2 * Q:3 * Q, G:G + 1]
        inter_b = stats[3 * Q:4 * Q, 0:G]
        pbsum = stats[3 * Q:4 * Q, G:G + 1]
        gsum_row = stats[4 * Q:4 * Q + 1, 0:G]

        dice_mat = 1.0 - (2.0 * inter + 1.0) / (psum + gsum_row + 1.0)        # [Q,G]
        bce_mat = -(lp_g - l1mp_g + s_1mp) * jnp.float32(1.0 / hw_total)      # [Q,G]
        # gt masks are binary -> gb == g and gbsum == gsum (no extra pass/matmul)
        iou_mat = inter_b / (pbsum + gsum_row - inter_b + 1e-6)               # [Q,G]
        sc = sc_ref[0]                                                        # [Q,1]
        s_mat = (sc - iou_mat) ** 2                                           # [Q,G]

        # class terms: softmax / log-softmax x one-hot (C contracted)
        logits = lg_ref[0]                                                    # [Q,C]
        oh = oh_ref[0]                                                        # [G,C]
        m = jnp.max(logits, axis=-1, keepdims=True)
        z = logits - m
        ez = jnp.exp(z)
        sez = jnp.sum(ez, axis=-1, keepdims=True)
        probs = ez / sez
        logp = z - jnp.log(sez)
        cost_prob = -lax.dot_general(probs, oh, dn,
                                     preferred_element_type=jnp.float32)      # [Q,G]
        ce_mat = -lax.dot_general(logp, oh, dn,
                                  preferred_element_type=jnp.float32)         # [Q,G]

        # greedy min-cost assignment: 2 XLU reductions / iter, scalar row/col
        # recovery -> VPU compares (no axis-wise maxes), min(Q,G) iterations.
        cost = dice_mat + cost_prob
        row_f = lax.broadcasted_iota(jnp.int32, (Q, G), 0).astype(jnp.float32)
        col_f = lax.broadcasted_iota(jnp.int32, (Q, G), 1).astype(jnp.float32)
        flat_f = row_f * G + col_f          # exact while Q*G < 2^24 (asserted)
        big_pos = jnp.float32(Q * G)
        g_f = jnp.float32(G)
        inv_g = jnp.float32(1.0 / G)
        n_match = min(Q, G)

        def greedy_body(_, carry):
            c, sel = carry
            mval = jnp.min(c, keepdims=True)                 # XLU reduce 1
            cand = jnp.where(c == mval, flat_f, big_pos)
            idx = jnp.min(cand, keepdims=True)               # XLU reduce 2 (tie-break)
            r = jnp.floor((idx + 0.5) * inv_g)               # scalar row recovery
            cc = idx - r * g_f                               # scalar col recovery
            sel = sel + (flat_f == idx).astype(jnp.float32)
            hit = jnp.logical_or(row_f == r, col_f == cc)    # VPU compares only
            c = jnp.where(hit, _BIG, c)
            return c, sel

        _, sel = lax.fori_loop(0, n_match, greedy_body,
                               (cost, jnp.zeros_like(cost)),
                               unroll=greedy_unroll)

        # reduce matched-pair losses (means over the min(Q,G) matched pairs)
        inv_n = jnp.float32(1.0 / n_match)
        loss_c = jnp.sum(sel * ce_mat) * inv_n
        loss_bce = jnp.sum(sel * bce_mat) * inv_n
        loss_dice = jnp.sum(sel * dice_mat) * inv_n
        loss_s = jnp.sum(sel * s_mat) * inv_n

        lane = lax.broadcasted_iota(jnp.int32, (1, 128), 1)
        o_ref[0] = (jnp.where(lane == 0, loss_c, 0.0)
                    + jnp.where(lane == 1, loss_bce, 0.0)
                    + jnp.where(lane == 2, loss_dice, 0.0)
                    + jnp.where(lane == 3, loss_s, 0.0))


# ------------------------------------------------------------------ wrapper
def pallas_match_loss(pred_masks, gt_masks, pred_logits_qc, gt_onehot, score_q):
    B, Q, HW = pred_masks.shape
    G = gt_masks.shape[1]
    C = pred_logits_qc.shape[-1]
    assert Q * G < (1 << 24), "flat position index must stay exact in f32"
    T = _pick_hw_tile(HW)
    n_hw = HW // T
    greedy_unroll = True if min(Q, G) <= 16 else 4
    kernel = functools.partial(_match_loss_kernel, hw_total=float(HW),
                               greedy_unroll=greedy_unroll)
    out = pl.pallas_call(
        kernel,
        out_shape=jax.ShapeDtypeStruct((B, 1, 128), jnp.float32),
        grid=(B, n_hw),
        in_specs=[pl.BlockSpec((1, Q, T), lambda b, h: (b, 0, h)),
                  pl.BlockSpec((1, G, T), lambda b, h: (b, 0, h)),
                  pl.BlockSpec((1, Q, C), lambda b, h: (b, 0, 0)),
                  pl.BlockSpec((1, G, C), lambda b, h: (b, 0, 0)),
                  pl.BlockSpec((1, Q, 1), lambda b, h: (b, 0, 0))],
        out_specs=pl.BlockSpec((1, 1, 128), lambda b, h: (b, 0, 0)),
        scratch_shapes=[pltpu.VMEM((4 * Q + 1, G + 1), jnp.float32)],
        compiler_params=pltpu.CompilerParams(
            dimension_semantics=("parallel", "arbitrary"),
            vmem_limit_bytes=48 * 1024 * 1024),
    )(pred_masks, gt_masks, pred_logits_qc, gt_onehot, score_q)
    return out[:, 0, 0:4]   # [B, 4] = (loss_c, loss_bce, loss_dice, loss_s)


@jax.jit
def match_loss_forward(gt_masks, gt_labels, pred_masks, pred_labels, score):
    """Mirrors match_loss.forward (assumes all gt_labels are valid, != -1)."""
    pred_logits_qc = jnp.transpose(pred_labels, (0, 2, 1)).astype(jnp.float32)  # [B,Q,C]
    gt_onehot = jax.nn.one_hot(gt_labels, NUM_CLASSES, dtype=jnp.float32)       # [B,G,C]
    score_q = jnp.transpose(score, (0, 2, 1)).astype(jnp.float32)               # [B,Q,1]
    # masks streamed as bf16 (halves HBM DMA on the mem-bound mask path);
    # gt masks are exactly representable (0/1), pred masks drift ~bf16 rounding.
    per = pallas_match_loss(pred_masks.astype(jnp.bfloat16),
                            gt_masks.astype(jnp.bfloat16),
                            pred_logits_qc, gt_onehot, score_q)                 # [B,4]
    loss_c = per[:, 0]
    loss_m = per[:, 1] + per[:, 2]
    loss_s = per[:, 3]
    total = loss_c + 4.0 * loss_m + 10.0 * loss_s
    return total.mean(), loss_c.mean(), loss_m.mean(), loss_s.mean()


# ------------------------------------------------------------- pure-host ref
def _ref_match_loss(gt_masks, gt_labels, pred_masks, pred_labels, score):
    gm = np.asarray(gt_masks, np.float32)
    gl = np.asarray(gt_labels)
    pm = np.asarray(pred_masks, np.float32)
    lg = np.transpose(np.asarray(pred_labels, np.float32), (0, 2, 1))       # [B,Q,C]
    sc = np.transpose(np.asarray(score, np.float32), (0, 2, 1))[..., 0]     # [B,Q]
    B, G, _ = gm.shape
    Q = pm.shape[1]
    oh = np.eye(NUM_CLASSES, dtype=np.float32)[gl]                          # [B,G,C]

    def softmax(x):
        e = np.exp(x - x.max(-1, keepdims=True))
        return e / e.sum(-1, keepdims=True)

    n_match = min(Q, G)
    tot = lc_a = lm_a = ls_a = 0.0
    for b in range(B):
        probs = softmax(lg[b])
        inter = pm[b] @ gm[b].T
        psum = pm[b].sum(-1, keepdims=True)
        gsum = gm[b].sum(-1, keepdims=True).T
        cost = 1 - (2 * inter + 1) / (psum + gsum + 1) - probs @ oh[b].T
        c = cost.copy()
        iq, ig = [], []
        for _ in range(n_match):
            q, g = np.unravel_index(np.argmin(c), c.shape)
            iq.append(q); ig.append(g)
            c[q, :] = 1e9; c[:, g] = 1e9
        iq, ig = np.array(iq), np.array(ig)
        p_m, g_m = pm[b, iq], gm[b, ig]
        lg_m, oh_m = lg[b, iq], oh[b, ig]
        sc_m = sc[b, iq]
        logp = lg_m - lg_m.max(-1, keepdims=True)
        logp = logp - np.log(np.exp(logp).sum(-1, keepdims=True))
        loss_c = float(np.mean(-np.sum(oh_m * logp, -1)))
        loss_bce = float(np.mean(-(g_m * np.maximum(np.log(p_m), -100.0)
                                   + (1 - g_m) * np.maximum(np.log(1 - p_m), -100.0))))
        loss_dice = float(np.mean(1 - (2 * (p_m * g_m).sum(-1) + 1)
                                  / (p_m.sum(-1) + g_m.sum(-1) + 1)))
        pb = (p_m >= 0.5).astype(np.float32)
        gb = (g_m > 0.5).astype(np.float32)
        ib = (pb * gb).sum(-1)
        iou = ib / (pb.sum(-1) + gb.sum(-1) - ib + 1e-6)
        loss_s = float(np.mean((sc_m - iou) ** 2))
        lc_a += loss_c
        lm_a += loss_bce + loss_dice
        ls_a += loss_s
        tot += loss_c + 4 * (loss_bce + loss_dice) + 10 * loss_s
    return tot / B, lc_a / B, lm_a / B, ls_a / B


if __name__ == "__main__":
    B, Q, G, H, W, C = 2, 8, 8, 16, 16, NUM_CLASSES
    HW = H * W
    key = jax.random.PRNGKey(0)
    k0, k1, k2, k3, k4 = jax.random.split(key, 5)

    gt_masks = (jax.random.uniform(k0, (B, G, HW)) > 0.5).astype(jnp.float32)
    gt_labels = jax.random.randint(k1, (B, G), 0, C).astype(jnp.int32)  # all valid
    pred_masks = jax.nn.sigmoid(jax.random.normal(k2, (B, Q, HW), jnp.float32))
    pred_labels = jax.random.normal(k3, (B, C, Q), jnp.float32)         # logits [B,C,Q]
    score = jax.nn.sigmoid(jax.random.normal(k4, (B, 1, Q), jnp.float32))

    total, lc, lm, ls = match_loss_forward(gt_masks, gt_labels, pred_masks,
                                           pred_labels, score)
    jax.block_until_ready((total, lc, lm, ls))

    # reference sees the same bf16-rounded pred masks the kernel streams
    pm_bf = np.asarray(pred_masks.astype(jnp.bfloat16).astype(jnp.float32))
    ref = _ref_match_loss(gt_masks, gt_labels, pm_bf, pred_labels, score)
    got = (float(total), float(lc), float(lm), float(ls))
    for a, b in zip(got, ref):
        assert abs(a - b) <= 5e-4 + 5e-4 * abs(b), (got, ref)

    print("KERNEL_OK")
</pallas_src>

<mosaic_0001>
module attributes {stable_mosaic.version = 11 : i64} {
  func.func @_match_loss_kernel(%arg0: i32, %arg1: i32, %arg2: memref<1x8x256xbf16, #tpu.memory_space<vmem>>, %arg3: memref<1x8x256xbf16, #tpu.memory_space<vmem>>, %arg4: memref<1x8x17xf32, #tpu.memory_space<vmem>>, %arg5: memref<1x8x17xf32, #tpu.memory_space<vmem>>, %arg6: memref<1x8x1xf32, #tpu.memory_space<vmem>>, %arg7: memref<1x1x128xf32, #tpu.memory_space<vmem>>, %arg8: memref<33x9xf32, #tpu.memory_space<vmem>>) attributes {dimension_semantics = [#tpu.dimension_semantics<parallel>, #tpu.dimension_semantics<arbitrary>], iteration_bounds = array<i64: 2, 1>, scalar_prefetch = 0 : i64, scratch_operands = 1 : i64, tpu.core_type = #tpu.core_type<tc>, window_params = [{transform_indices = @transform_0, window_bounds = array<i64: 1, 8, 256>}, {transform_indices = @transform_1, window_bounds = array<i64: 1, 8, 256>}, {transform_indices = @transform_2, window_bounds = array<i64: 1, 8, 17>}, {transform_indices = @transform_3, window_bounds = array<i64: 1, 8, 17>}, {transform_indices = @transform_4, window_bounds = array<i64: 1, 8, 1>}, {transform_indices = @transform_5, window_bounds = array<i64: 1, 1, 128>}]} {
    %c0_i32 = arith.constant 0 : i32
    %0 = arith.cmpi eq, %arg1, %c0_i32 : i32
    %1 = arith.extui %0 : i1 to i32
    %c0_i32_0 = arith.constant 0 : i32
    %2 = arith.cmpi ne, %1, %c0_i32_0 : i32
    scf.if %2 {
      %cst_17 = arith.constant 0.000000e+00 : f32
      %31 = vector.broadcast %cst_17 : f32 to vector<33x9xf32>
      %c0_18 = arith.constant 0 : index
      %c0_19 = arith.constant 0 : index
      %32 = vector.load %arg8[%c0_18, %c0_19] : memref<33x9xf32, #tpu.memory_space<vmem>>, vector<33x9xf32>
      tpu.vector_store %arg8[%c0_18, %c0_19], %31 {strides = array<i32>} : memref<33x9xf32, #tpu.memory_space<vmem>>, vector<33x9xf32>,
    } else {
    }
    %c0 = arith.constant 0 : index
    %c0_1 = arith.constant 0 : index
    %c0_2 = arith.constant 0 : index
    %3 = vector.load %arg2[%c0, %c0_1, %c0_2] : memref<1x8x256xbf16, #tpu.memory_space<vmem>>, vector<1x8x256xbf16>
    %4 = vector.shape_cast %3 : vector<1x8x256xbf16> to vector<8x256xbf16>
    %5 = arith.extf %4 : vector<8x256xbf16> to vector<8x256xf32>
    %c0_3 = arith.constant 0 : index
    %c0_4 = arith.constant 0 : index
    %c0_5 = arith.constant 0 : index
    %6 = vector.load %arg3[%c0_3, %c0_4, %c0_5] : memref<1x8x256xbf16, #tpu.memory_space<vmem>>, vector<1x8x256xbf16>
    %7 = vector.shape_cast %6 : vector<1x8x256xbf16> to vector<8x256xbf16>
    %8 = arith.extf %7 : vector<8x256xbf16> to vector<8x256xf32>
    %9 = math.log %5 : vector<8x256xf32>
    %cst = arith.constant -1.000000e+02 : f32
    %10 = vector.broadcast %cst : f32 to vector<8x256xf32>
    %11 = arith.maximumf %9, %10 : vector<8x256xf32>
    %cst_6 = arith.constant 1.000000e+00 : f32
    %12 = vector.broadcast %cst_6 : f32 to vector<8x256xf32>
    %13 = arith.subf %12, %5 : vector<8x256xf32>
    %14 = math.log %13 : vector<8x256xf32>
    %cst_7 = arith.constant -1.000000e+02 : f32
    %15 = vector.broadcast %cst_7 : f32 to vector<8x256xf32>
    %16 = arith.maximumf %14, %15 : vector<8x256xf32>
    %cst_8 = arith.constant 5.000000e-01 : f32
    %17 = vector.broadcast %cst_8 : f32 to vector<8x256xf32>
    %18 = arith.cmpf oge, %5, %17 : vector<8x256xf32>
    %19 = arith.extui %18 : vector<8x256xi1> to vector<8x256xi32>
    %20 = arith.sitofp %19 : vector<8x256xi32> to vector<8x256xf32>
    %cst_9 = arith.constant 1.000000e+00 : f32
    %21 = vector.broadcast %cst_9 : f32 to vector<1x256xf32>
    %22 = tpu.concatenate %5, %11, %16, %20, %21 in 0 : vector<8x256xf32>, vector<8x256xf32>, vector<8x256xf32>, vector<8x256xf32>, vector<1x256xf32> -> vector<33x256xf32>
    %23 = tpu.concatenate %8, %21 in 0 : vector<8x256xf32>, vector<1x256xf32> -> vector<9x256xf32>
    %c0_10 = arith.constant 0 : index
    %c0_11 = arith.constant 0 : index
    %24 = vector.load %arg8[%c0_10, %c0_11] : memref<33x9xf32, #tpu.memory_space<vmem>>, vector<33x9xf32>
    %cst_12 = arith.constant dense<0.000000e+00> : vector<33x9xf32>
    %25 = tpu.matmul %22, %23, %cst_12 {dimension_numbers = #tpu.dot_dimension_numbers<[1], [1], [0], [0], [0, 0, 1, 0], [], []>} : vector<33x256xf32>, vector<9x256xf32>, vector<33x9xf32> -> vector<33x9xf32>
    %26 = arith.addf %24, %25 : vector<33x9xf32>
    %c0_13 = arith.constant 0 : index
    %c0_14 = arith.constant 0 : index
    %27 = vector.load %arg8[%c0_13, %c0_14] : memref<33x9xf32, #tpu.memory_space<vmem>>, vector<33x9xf32>
    tpu.vector_store %arg8[%c0_13, %c0_14], %26 {strides = array<i32>} : memref<33x9xf32, #tpu.memory_space<vmem>>, vector<33x9xf32>,
    %c0_i32_15 = arith.constant 0 : i32
    %28 = arith.cmpi eq, %arg1, %c0_i32_15 : i32
    %29 = arith.extui %28 : i1 to i32
    %c0_i32_16 = arith.constant 0 : i32
    %30 = arith.cmpi ne, %29, %c0_i32_16 : i32
    scf.if %30 {
      %c0_17 = arith.constant 0 : index
      %c0_18 = arith.constant 0 : index
      %31 = vector.load %arg8[%c0_17, %c0_18] : memref<33x9xf32, #tpu.memory_space<vmem>>, vector<33x9xf32>
      %32 = vector.extract_strided_slice %31 {offsets = [0, 0], sizes = [8, 8], strides = [1, 1]} : vector<33x9xf32> to vector<8x8xf32>
      %33 = vector.extract_strided_slice %31 {offsets = [0, 8], sizes = [8, 1], strides = [1, 1]} : vector<33x9xf32> to vector<8x1xf32>
      %34 = vector.extract_strided_slice %31 {offsets = [8, 0], sizes = [8, 8], strides = [1, 1]} : vector<33x9xf32> to vector<8x8xf32>
      %35 = vector.extract_strided_slice %31 {offsets = [16, 0], sizes = [8, 8], strides = [1, 1]} : vector<33x9xf32> to vector<8x8xf32>
      %36 = vector.extract_strided_slice %31 {offsets = [16, 8], sizes = [8, 1], strides = [1, 1]} : vector<33x9xf32> to vector<8x1xf32>
      %37 = vector.extract_strided_slice %31 {offsets = [24, 0], sizes = [8, 8], strides = [1, 1]} : vector<33x9xf32> to vector<8x8xf32>
      %38 = vector.extract_strided_slice %31 {offsets = [24, 8], sizes = [8, 1], strides = [1, 1]} : vector<33x9xf32> to vector<8x1xf32>
      %39 = vector.extract_strided_slice %31 {offsets = [32, 0], sizes = [1, 8], strides = [1, 1]} : vector<33x9xf32> to vector<1x8xf32>
      %cst_19 = arith.constant 2.000000e+00 : f32
      %40 = vector.broadcast %cst_19 : f32 to vector<8x8xf32>
      %41 = arith.mulf %40, %32 : vector<8x8xf32>
      %cst_20 = arith.constant 1.000000e+00 : f32
      %42 = vector.broadcast %cst_20 : f32 to vector<8x8xf32>
      %43 = arith.addf %41, %42 : vector<8x8xf32>
      %44 = vector.broadcast %33 : vector<8x1xf32> to vector<8x8xf32>
      %45 = vector.broadcast %39 : vector<1x8xf32> to vector<8x8xf32>
      %46 = arith.addf %44, %45 : vector<8x8xf32>
      %cst_21 = arith.constant 1.000000e+00 : f32
      %47 = vector.broadcast %cst_21 : f32 to vector<8x8xf32>
      %48 = arith.addf %46, %47 : vector<8x8xf32>
      %49 = arith.divf %43, %48 : vector<8x8xf32>
      %cst_22 = arith.constant 1.000000e+00 : f32
      %50 = vector.broadcast %cst_22 : f32 to vector<8x8xf32>
      %51 = arith.subf %50, %49 : vector<8x8xf32>
      %52 = arith.subf %34, %35 : vector<8x8xf32>
      %53 = vector.broadcast %36 : vector<8x1xf32> to vector<8x8xf32>
      %54 = arith.addf %52, %53 : vector<8x8xf32>
      %cst_23 = arith.constant 0.000000e+00 : f32
      %55 = vector.broadcast %cst_23 : f32 to vector<8x8xf32>
      %56 = arith.subf %55, %54 : vector<8x8xf32>
      %cst_24 = arith.constant 3.906250e-03 : f32
      %57 = vector.broadcast %cst_24 : f32 to vector<8x8xf32>
      %58 = arith.mulf %56, %57 : vector<8x8xf32>
      %59 = vector.broadcast %38 : vector<8x1xf32> to vector<8x8xf32>
      %60 = vector.broadcast %39 : vector<1x8xf32> to vector<8x8xf32>
      %61 = arith.addf %59, %60 : vector<8x8xf32>
      %62 = arith.subf %61, %37 : vector<8x8xf32>
      %cst_25 = arith.constant 9.99999997E-7 : f32
      %63 = vector.broadcast %cst_25 : f32 to vector<8x8xf32>
      %64 = arith.addf %62, %63 : vector<8x8xf32>
      %65 = arith.divf %37, %64 : vector<8x8xf32>
      %c0_26 = arith.constant 0 : index
      %c0_27 = arith.constant 0 : index
      %c0_28 = arith.constant 0 : index
      %66 = vector.load %arg6[%c0_26, %c0_27, %c0_28] : memref<1x8x1xf32, #tpu.memory_space<vmem>>, vector<1x8x1xf32>
      %67 = vector.shape_cast %66 : vector<1x8x1xf32> to vector<8x1xf32>
      %68 = vector.broadcast %67 : vector<8x1xf32> to vector<8x8xf32>
      %69 = arith.subf %68, %65 : vector<8x8xf32>
      %70 = arith.mulf %69, %69 : vector<8x8xf32>
      %c0_29 = arith.constant 0 : index
      %c0_30 = arith.constant 0 : index
      %c0_31 = arith.constant 0 : index
      %71 = vector.load %arg4[%c0_29, %c0_30, %c0_31] : memref<1x8x17xf32, #tpu.memory_space<vmem>>, vector<1x8x17xf32>
      %72 = vector.shape_cast %71 : vector<1x8x17xf32> to vector<8x17xf32>
      %c0_32 = arith.constant 0 : index
      %c0_33 = arith.constant 0 : index
      %c0_34 = arith.constant 0 : index
      %73 = vector.load %arg5[%c0_32, %c0_33, %c0_34] : memref<1x8x17xf32, #tpu.memory_space<vmem>>, vector<1x8x17xf32>
      %74 = vector.shape_cast %73 : vector<1x8x17xf32> to vector<8x17xf32>
      %cst_35 = arith.constant dense<0xFF800000> : vector<8xf32>
      %75 = vector.multi_reduction <maximumf>, %72, %cst_35 [1] : vector<8x17xf32> to vector<8xf32>
      %76 = vector.shape_cast %75 : vector<8xf32> to vector<8x1xf32>
      %77 = vector.broadcast %76 : vector<8x1xf32> to vector<8x17xf32>
      %78 = arith.subf %72, %77 : vector<8x17xf32>
      %79 = math.exp %78 : vector<8x17xf32>
      %cst_36 = arith.constant dense<0.000000e+00> : vector<8xf32>
      %80 = vector.multi_reduction <add>, %79, %cst_36 [1] : vector<8x17xf32> to vector<8xf32>
      %81 = vector.shape_cast %80 : vector<8xf32> to vector<8x1xf32>
      %82 = vector.broadcast %81 : vector<8x1xf32> to vector<8x17xf32>
      %83 = arith.divf %79, %82 : vector<8x17xf32>
      %84 = math.log %81 : vector<8x1xf32>
      %85 = vector.broadcast %84 : vector<8x1xf32> to vector<8x17xf32>
      %86 = arith.subf %78, %85 : vector<8x17xf32>
      %cst_37 = arith.constant dense<0.000000e+00> : vector<8x8xf32>
      %87 = tpu.matmul %83, %74, %cst_37 {dimension_numbers = #tpu.dot_dimension_numbers<[1], [1], [0], [0], [0, 0, 1, 0], [], []>} : vector<8x17xf32>, vector<8x17xf32>, vector<8x8xf32> -> vector<8x8xf32>
      %cst_38 = arith.constant 0.000000e+00 : f32
      %88 = vector.broadcast %cst_38 : f32 to vector<8x8xf32>
      %89 = arith.subf %88, %87 : vector<8x8xf32>
      %cst_39 = arith.constant dense<0.000000e+00> : vector<8x8xf32>
      %90 = tpu.matmul %86, %74, %cst_39 {dimension_numbers = #tpu.dot_dimension_numbers<[1], [1], [0], [0], [0, 0, 1, 0], [], []>} : vector<8x17xf32>, vector<8x17xf32>, vector<8x8xf32> -> vector<8x8xf32>
      %cst_40 = arith.constant 0.000000e+00 : f32
      %91 = vector.broadcast %cst_40 : f32 to vector<8x8xf32>
      %92 = arith.subf %91, %90 : vector<8x8xf32>
      %93 = arith.addf %51, %89 : vector<8x8xf32>
      %94 = tpu.iota {dimensions = array<i32: 0>} : vector<8x8xi32>
      %95 = arith.sitofp %94 : vector<8x8xi32> to vector<8x8xf32>
      %96 = tpu.iota {dimensions = array<i32: 1>} : vector<8x8xi32>
      %97 = arith.sitofp %96 : vector<8x8xi32> to vector<8x8xf32>
      %cst_41 = arith.constant 8.000000e+00 : f32
      %98 = vector.broadcast %cst_41 : f32 to vector<8x8xf32>
      %99 = arith.mulf %95, %98 : vector<8x8xf32>
      %100 = arith.addf %99, %97 : vector<8x8xf32>
      %cst_42 = arith.constant 0.000000e+00 : f32
      %101 = vector.broadcast %cst_42 : f32 to vector<8x8xf32>
      %cst_43 = arith.constant 6.400000e+01 : f32
      %cst_44 = arith.constant 1.250000e-01 : f32
      %cst_45 = arith.constant 8.000000e+00 : f32
      %c0_i32_46 = arith.constant 0 : i32
      %102 = vector.shape_cast %93 : vector<8x8xf32> to vector<1x8x8xf32>
      %cst_47 = arith.constant dense<0x7F800000> : vector<1xf32>
      %103 = vector.multi_reduction <minimumf>, %102, %cst_47 [1, 2] : vector<1x8x8xf32> to vector<1xf32>
      %104 = vector.shape_cast %103 : vector<1xf32> to vector<1x1x1xf32>
      %105 = vector.extract %104[0, 0, 0] : f32 from vector<1x1x1xf32>
      %106 = vector.broadcast %105 : f32 to vector<1x1xf32>
      %107 = vector.broadcast %106 : vector<1x1xf32> to vector<8x8xf32>
      %108 = arith.cmpf oeq, %93, %107 : vector<8x8xf32>
      %109 = vector.broadcast %cst_43 : f32 to vector<8x8xf32>
      %110 = arith.select %108, %100, %109 : vector<8x8xi1>, vector<8x8xf32>
      %111 = vector.shape_cast %110 : vector<8x8xf32> to vector<1x8x8xf32>
      %cst_48 = arith.constant dense<0x7F800000> : vector<1xf32>
      %112 = vector.multi_reduction <minimumf>, %111, %cst_48 [1, 2] : vector<1x8x8xf32> to vector<1xf32>
      %113 = vector.shape_cast %112 : vector<1xf32> to vector<1x1x1xf32>
      %114 = vector.extract %113[0, 0, 0] : f32 from vector<1x1x1xf32>
      %115 = vector.broadcast %114 : f32 to vector<1x1xf32>
      %cst_49 = arith.constant 5.000000e-01 : f32
      %116 = vector.broadcast %cst_49 : f32 to vector<1x1xf32>
      %117 = arith.addf %115, %116 : vector<1x1xf32>
      %118 = vector.broadcast %cst_44 : f32 to vector<1x1xf32>
      %119 = arith.mulf %117, %118 : vector<1x1xf32>
      %120 = math.floor %119 : vector<1x1xf32>
      %121 = vector.broadcast %cst_45 : f32 to vector<1x1xf32>
      %122 = arith.mulf %120, %121 : vector<1x1xf32>
      %123 = arith.subf %115, %122 : vector<1x1xf32>
      %124 = vector.broadcast %115 : vector<1x1xf32> to vector<8x8xf32>
      %125 = arith.cmpf oeq, %100, %124 : vector<8x8xf32>
      %126 = arith.extui %125 : vector<8x8xi1> to vector<8x8xi32>
      %127 = arith.sitofp %126 : vector<8x8xi32> to vector<8x8xf32>
      %128 = arith.addf %101, %127 : vector<8x8xf32>
      %129 = vector.broadcast %120 : vector<1x1xf32> to vector<8x8xf32>
      %130 = arith.cmpf oeq, %95, %129 : vector<8x8xf32>
      %131 = vector.broadcast %123 : vector<1x1xf32> to vector<8x8xf32>
      %132 = arith.cmpf oeq, %97, %131 : vector<8x8xf32>
      %133 = arith.ori %130, %132 : vector<8x8xi1>
      %cst_50 = arith.constant 1.000000e+09 : f32
      %134 = vector.broadcast %cst_50 : f32 to vector<8x8xf32>
      %135 = arith.select %133, %134, %93 : vector<8x8xi1>, vector<8x8xf32>
      %c1_i32 = arith.constant 1 : i32
      %136 = vector.shape_cast %135 : vector<8x8xf32> to vector<1x8x8xf32>
      %cst_51 = arith.constant dense<0x7F800000> : vector<1xf32>
      %137 = vector.multi_reduction <minimumf>, %136, %cst_51 [1, 2] : vector<1x8x8xf32> to vector<1xf32>
      %138 = vector.shape_cast %137 : vector<1xf32> to vector<1x1x1xf32>
      %139 = vector.extract %138[0, 0, 0] : f32 from vector<1x1x1xf32>
      %140 = vector.broadcast %139 : f32 to vector<1x1xf32>
      %141 = vector.broadcast %140 : vector<1x1xf32> to vector<8x8xf32>
      %142 = arith.cmpf oeq, %135, %141 : vector<8x8xf32>
      %143 = vector.broadcast %cst_43 : f32 to vector<8x8xf32>
      %144 = arith.select %142, %100, %143 : vector<8x8xi1>, vector<8x8xf32>
      %145 = vector.shape_cast %144 : vector<8x8xf32> to vector<1x8x8xf32>
      %cst_52 = arith.constant dense<0x7F800000> : vector<1xf32>
      %146 = vector.multi_reduction <minimumf>, %145, %cst_52 [1, 2] : vector<1x8x8xf32> to vector<1xf32>
      %147 = vector.shape_cast %146 : vector<1xf32> to vector<1x1x1xf32>
      %148 = vector.extract %147[0, 0, 0] : f32 from vector<1x1x1xf32>
      %149 = vector.broadcast %148 : f32 to vector<1x1xf32>
      %cst_53 = arith.constant 5.000000e-01 : f32
      %150 = vector.broadcast %cst_53 : f32 to vector<1x1xf32>
      %151 = arith.addf %149, %150 : vector<1x1xf32>
      %152 = vector.broadcast %cst_44 : f32 to vector<1x1xf32>
      %153 = arith.mulf %151, %152 : vector<1x1xf32>
      %154 = math.floor %153 : vector<1x1xf32>
      %155 = vector.broadcast %cst_45 : f32 to vector<1x1xf32>
      %156 = arith.mulf %154, %155 : vector<1x1xf32>
      %157 = arith.subf %149, %156 : vector<1x1xf32>
      %158 = vector.broadcast %149 : vector<1x1xf32> to vector<8x8xf32>
      %159 = arith.cmpf oeq, %100, %158 : vector<8x8xf32>
      %160 = arith.extui %159 : vector<8x8xi1> to vector<8x8xi32>
      %161 = arith.sitofp %160 : vector<8x8xi32> to vector<8x8xf32>
      %162 = arith.addf %128, %161 : vector<8x8xf32>
      %163 = vector.broadcast %154 : vector<1x1xf32> to vector<8x8xf32>
      %164 = arith.cmpf oeq, %95, %163 : vector<8x8xf32>
      %165 = vector.broadcast %157 : vector<1x1xf32> to vector<8x8xf32>
      %166 = arith.cmpf oeq, %97, %165 : vector<8x8xf32>
      %167 = arith.ori %164, %166 : vector<8x8xi1>
      %cst_54 = arith.constant 1.000000e+09 : f32
      %168 = vector.broadcast %cst_54 : f32 to vector<8x8xf32>
      %169 = arith.select %167, %168, %135 : vector<8x8xi1>, vector<8x8xf32>
      %c2_i32 = arith.constant 2 : i32
      %170 = vector.shape_cast %169 : vector<8x8xf32> to vector<1x8x8xf32>
      %cst_55 = arith.constant dense<0x7F800000> : vector<1xf32>
      %171 = vector.multi_reduction <minimumf>, %170, %cst_55 [1, 2] : vector<1x8x8xf32> to vector<1xf32>
      %172 = vector.shape_cast %171 : vector<1xf32> to vector<1x1x1xf32>
      %173 = vector.extract %172[0, 0, 0] : f32 from vector<1x1x1xf32>
      %174 = vector.broadcast %173 : f32 to vector<1x1xf32>
      %175 = vector.broadcast %174 : vector<1x1xf32> to vector<8x8xf32>
      %176 = arith.cmpf oeq, %169, %175 : vector<8x8xf32>
      %177 = vector.broadcast %cst_43 : f32 to vector<8x8xf32>
      %178 = arith.select %176, %100, %177 : vector<8x8xi1>, vector<8x8xf32>
      %179 = vector.shape_cast %178 : vector<8x8xf32> to vector<1x8x8xf32>
      %cst_56 = arith.constant dense<0x7F800000> : vector<1xf32>
      %180 = vector.multi_reduction <minimumf>, %179, %cst_56 [1, 2] : vector<1x8x8xf32> to vector<1xf32>
      %181 = vector.shape_cast %180 : vector<1xf32> to vector<1x1x1xf32>
      %182 = vector.extract %181[0, 0, 0] : f32 from vector<1x1x1xf32>
      %183 = vector.broadcast %182 : f32 to vector<1x1xf32>
      %cst_57 = arith.constant 5.000000e-01 : f32
      %184 = vector.broadcast %cst_57 : f32 to vector<1x1xf32>
      %185 = arith.addf %183, %184 : vector<1x1xf32>
      %186 = vector.broadcast %cst_44 : f32 to vector<1x1xf32>
      %187 = arith.mulf %185, %186 : vector<1x1xf32>
      %188 = math.floor %187 : vector<1x1xf32>
      %189 = vector.broadcast %cst_45 : f32 to vector<1x1xf32>
      %190 = arith.mulf %188, %189 : vector<1x1xf32>
      %191 = arith.subf %183, %190 : vector<1x1xf32>
      %192 = vector.broadcast %183 : vector<1x1xf32> to vector<8x8xf32>
      %193 = arith.cmpf oeq, %100, %192 : vector<8x8xf32>
      %194 = arith.extui %193 : vector<8x8xi1> to vector<8x8xi32>
      %195 = arith.sitofp %194 : vector<8x8xi32> to vector<8x8xf32>
      %196 = arith.addf %162, %195 : vector<8x8xf32>
      %197 = vector.broadcast %188 : vector<1x1xf32> to vector<8x8xf32>
      %198 = arith.cmpf oeq, %95, %197 : vector<8x8xf32>
      %199 = vector.broadcast %191 : vector<1x1xf32> to vector<8x8xf32>
      %200 = arith.cmpf oeq, %97, %199 : vector<8x8xf32>
      %201 = arith.ori %198, %200 : vector<8x8xi1>
      %cst_58 = arith.constant 1.000000e+09 : f32
      %202 = vector.broadcast %cst_58 : f32 to vector<8x8xf32>
      %203 = arith.select %201, %202, %169 : vector<8x8xi1>, vector<8x8xf32>
      %c3_i32 = arith.constant 3 : i32
      %204 = vector.shape_cast %203 : vector<8x8xf32> to vector<1x8x8xf32>
      %cst_59 = arith.constant dense<0x7F800000> : vector<1xf32>
      %205 = vector.multi_reduction <minimumf>, %204, %cst_59 [1, 2] : vector<1x8x8xf32> to vector<1xf32>
      %206 = vector.shape_cast %205 : vector<1xf32> to vector<1x1x1xf32>
      %207 = vector.extract %206[0, 0, 0] : f32 from vector<1x1x1xf32>
      %208 = vector.broadcast %207 : f32 to vector<1x1xf32>
      %209 = vector.broadcast %208 : vector<1x1xf32> to vector<8x8xf32>
      %210 = arith.cmpf oeq, %203, %209 : vector<8x8xf32>
      %211 = vector.broadcast %cst_43 : f32 to vector<8x8xf32>
      %212 = arith.select %210, %100, %211 : vector<8x8xi1>, vector<8x8xf32>
      %213 = vector.shape_cast %212 : vector<8x8xf32> to vector<1x8x8xf32>
      %cst_60 = arith.constant dense<0x7F800000> : vector<1xf32>
      %214 = vector.multi_reduction <minimumf>, %213, %cst_60 [1, 2] : vector<1x8x8xf32> to vector<1xf32>
      %215 = vector.shape_cast %214 : vector<1xf32> to vector<1x1x1xf32>
      %216 = vector.extract %215[0, 0, 0] : f32 from vector<1x1x1xf32>
      %217 = vector.broadcast %216 : f32 to vector<1x1xf32>
      %cst_61 = arith.constant 5.000000e-01 : f32
      %218 = vector.broadcast %cst_61 : f32 to vector<1x1xf32>
      %219 = arith.addf %217, %218 : vector<1x1xf32>
      %220 = vector.broadcast %cst_44 : f32 to vector<1x1xf32>
      %221 = arith.mulf %219, %220 : vector<1x1xf32>
      %222 = math.floor %221 : vector<1x1xf32>
      %223 = vector.broadcast %cst_45 : f32 to vector<1x1xf32>
      %224 = arith.mulf %222, %223 : vector<1x1xf32>
      %225 = arith.subf %217, %224 : vector<1x1xf32>
      %226 = vector.broadcast %217 : vector<1x1xf32> to vector<8x8xf32>
      %227 = arith.cmpf oeq, %100, %226 : vector<8x8xf32>
      %228 = arith.extui %227 : vector<8x8xi1> to vector<8x8xi32>
      %229 = arith.sitofp %228 : vector<8x8xi32> to vector<8x8xf32>
      %230 = arith.addf %196, %229 : vector<8x8xf32>
      %231 = vector.broadcast %222 : vector<1x1xf32> to vector<8x8xf32>
      %232 = arith.cmpf oeq, %95, %231 : vector<8x8xf32>
      %233 = vector.broadcast %225 : vector<1x1xf32> to vector<8x8xf32>
      %234 = arith.cmpf oeq, %97, %233 : vector<8x8xf32>
      %235 = arith.ori %232, %234 : vector<8x8xi1>
      %cst_62 = arith.constant 1.000000e+09 : f32
      %236 = vector.broadcast %cst_62 : f32 to vector<8x8xf32>
      %237 = arith.select %235, %236, %203 : vector<8x8xi1>, vector<8x8xf32>
      %c4_i32 = arith.constant 4 : i32
      %238 = vector.shape_cast %237 : vector<8x8xf32> to vector<1x8x8xf32>
      %cst_63 = arith.constant dense<0x7F800000> : vector<1xf32>
      %239 = vector.multi_reduction <minimumf>, %238, %cst_63 [1, 2] : vector<1x8x8xf32> to vector<1xf32>
      %240 = vector.shape_cast %239 : vector<1xf32> to vector<1x1x1xf32>
      %241 = vector.extract %240[0, 0, 0] : f32 from vector<1x1x1xf32>
      %242 = vector.broadcast %241 : f32 to vector<1x1xf32>
      %243 = vector.broadcast %242 : vector<1x1xf32> to vector<8x8xf32>
      %244 = arith.cmpf oeq, %237, %243 : vector<8x8xf32>
      %245 = vector.broadcast %cst_43 : f32 to vector<8x8xf32>
      %246 = arith.select %244, %100, %245 : vector<8x8xi1>, vector<8x8xf32>
      %247 = vector.shape_cast %246 : vector<8x8xf32> to vector<1x8x8xf32>
      %cst_64 = arith.constant dense<0x7F800000> : vector<1xf32>
      %248 = vector.multi_reduction <minimumf>, %247, %cst_64 [1, 2] : vector<1x8x8xf32> to vector<1xf32>
      %249 = vector.shape_cast %248 : vector<1xf32> to vector<1x1x1xf32>
      %250 = vector.extract %249[0, 0, 0] : f32 from vector<1x1x1xf32>
      %251 = vector.broadcast %250 : f32 to vector<1x1xf32>
      %cst_65 = arith.constant 5.000000e-01 : f32
      %252 = vector.broadcast %cst_65 : f32 to vector<1x1xf32>
      %253 = arith.addf %251, %252 : vector<1x1xf32>
      %254 = vector.broadcast %cst_44 : f32 to vector<1x1xf32>
      %255 = arith.mulf %253, %254 : vector<1x1xf32>
      %256 = math.floor %255 : vector<1x1xf32>
      %257 = vector.broadcast %cst_45 : f32 to vector<1x1xf32>
      %258 = arith.mulf %256, %257 : vector<1x1xf32>
      %259 = arith.subf %251, %258 : vector<1x1xf32>
      %260 = vector.broadcast %251 : vector<1x1xf32> to vector<8x8xf32>
      %261 = arith.cmpf oeq, %100, %260 : vector<8x8xf32>
      %262 = arith.extui %261 : vector<8x8xi1> to vector<8x8xi32>
      %263 = arith.sitofp %262 : vector<8x8xi32> to vector<8x8xf32>
      %264 = arith.addf %230, %263 : vector<8x8xf32>
      %265 = vector.broadcast %256 : vector<1x1xf32> to vector<8x8xf32>
      %266 = arith.cmpf oeq, %95, %265 : vector<8x8xf32>
      %267 = vector.broadcast %259 : vector<1x1xf32> to vector<8x8xf32>
      %268 = arith.cmpf oeq, %97, %267 : vector<8x8xf32>
      %269 = arith.ori %266, %268 : vector<8x8xi1>
      %cst_66 = arith.constant 1.000000e+09 : f32
      %270 = vector.broadcast %cst_66 : f32 to vector<8x8xf32>
      %271 = arith.select %269, %270, %237 : vector<8x8xi1>, vector<8x8xf32>
      %c5_i32 = arith.constant 5 : i32
      %272 = vector.shape_cast %271 : vector<8x8xf32> to vector<1x8x8xf32>
      %cst_67 = arith.constant dense<0x7F800000> : vector<1xf32>
      %273 = vector.multi_reduction <minimumf>, %272, %cst_67 [1, 2] : vector<1x8x8xf32> to vector<1xf32>
      %274 = vector.shape_cast %273 : vector<1xf32> to vector<1x1x1xf32>
      %275 = vector.extract %274[0, 0, 0] : f32 from vector<1x1x1xf32>
      %276 = vector.broadcast %275 : f32 to vector<1x1xf32>
      %277 = vector.broadcast %276 : vector<1x1xf32> to vector<8x8xf32>
      %278 = arith.cmpf oeq, %271, %277 : vector<8x8xf32>
      %279 = vector.broadcast %cst_43 : f32 to vector<8x8xf32>
      %280 = arith.select %278, %100, %279 : vector<8x8xi1>, vector<8x8xf32>
      %281 = vector.shape_cast %280 : vector<8x8xf32> to vector<1x8x8xf32>
      %cst_68 = arith.constant dense<0x7F800000> : vector<1xf32>
      %282 = vector.multi_reduction <minimumf>, %281, %cst_68 [1, 2] : vector<1x8x8xf32> to vector<1xf32>
      %283 = vector.shape_cast %282 : vector<1xf32> to vector<1x1x1xf32>
      %284 = vector.extract %283[0, 0, 0] : f32 from vector<1x1x1xf32>
      %285 = vector.broadcast %284 : f32 to vector<1x1xf32>
      %cst_69 = arith.constant 5.000000e-01 : f32
      %286 = vector.broadcast %cst_69 : f32 to vector<1x1xf32>
      %287 = arith.addf %285, %286 : vector<1x1xf32>
      %288 = vector.broadcast %cst_44 : f32 to vector<1x1xf32>
      %289 = arith.mulf %287, %288 : vector<1x1xf32>
      %290 = math.floor %289 : vector<1x1xf32>
      %291 = vector.broadcast %cst_45 : f32 to vector<1x1xf32>
      %292 = arith.mulf %290, %291 : vector<1x1xf32>
      %293 = arith.subf %285, %292 : vector<1x1xf32>
      %294 = vector.broadcast %285 : vector<1x1xf32> to vector<8x8xf32>
      %295 = arith.cmpf oeq, %100, %294 : vector<8x8xf32>
      %296 = arith.extui %295 : vector<8x8xi1> to vector<8x8xi32>
      %297 = arith.sitofp %296 : vector<8x8xi32> to vector<8x8xf32>
      %298 = arith.addf %264, %297 : vector<8x8xf32>
      %299 = vector.broadcast %290 : vector<1x1xf32> to vector<8x8xf32>
      %300 = arith.cmpf oeq, %95, %299 : vector<8x8xf32>
      %301 = vector.broadcast %293 : vector<1x1xf32> to vector<8x8xf32>
      %302 = arith.cmpf oeq, %97, %301 : vector<8x8xf32>
      %303 = arith.ori %300, %302 : vector<8x8xi1>
      %cst_70 = arith.constant 1.000000e+09 : f32
      %304 = vector.broadcast %cst_70 : f32 to vector<8x8xf32>
      %305 = arith.select %303, %304, %271 : vector<8x8xi1>, vector<8x8xf32>
      %c6_i32 = arith.constant 6 : i32
      %306 = vector.shape_cast %305 : vector<8x8xf32> to vector<1x8x8xf32>
      %cst_71 = arith.constant dense<0x7F800000> : vector<1xf32>
      %307 = vector.multi_reduction <minimumf>, %306, %cst_71 [1, 2] : vector<1x8x8xf32> to vector<1xf32>
      %308 = vector.shape_cast %307 : vector<1xf32> to vector<1x1x1xf32>
      %309 = vector.extract %308[0, 0, 0] : f32 from vector<1x1x1xf32>
      %310 = vector.broadcast %309 : f32 to vector<1x1xf32>
      %311 = vector.broadcast %310 : vector<1x1xf32> to vector<8x8xf32>
      %312 = arith.cmpf oeq, %305, %311 : vector<8x8xf32>
      %313 = vector.broadcast %cst_43 : f32 to vector<8x8xf32>
      %314 = arith.select %312, %100, %313 : vector<8x8xi1>, vector<8x8xf32>
      %315 = vector.shape_cast %314 : vector<8x8xf32> to vector<1x8x8xf32>
      %cst_72 = arith.constant dense<0x7F800000> : vector<1xf32>
      %316 = vector.multi_reduction <minimumf>, %315, %cst_72 [1, 2] : vector<1x8x8xf32> to vector<1xf32>
      %317 = vector.shape_cast %316 : vector<1xf32> to vector<1x1x1xf32>
      %318 = vector.extract %317[0, 0, 0] : f32 from vector<1x1x1xf32>
      %319 = vector.broadcast %318 : f32 to vector<1x1xf32>
      %cst_73 = arith.constant 5.000000e-01 : f32
      %320 = vector.broadcast %cst_73 : f32 to vector<1x1xf32>
      %321 = arith.addf %319, %320 : vector<1x1xf32>
      %322 = vector.broadcast %cst_44 : f32 to vector<1x1xf32>
      %323 = arith.mulf %321, %322 : vector<1x1xf32>
      %324 = math.floor %323 : vector<1x1xf32>
      %325 = vector.broadcast %cst_45 : f32 to vector<1x1xf32>
      %326 = arith.mulf %324, %325 : vector<1x1xf32>
      %327 = arith.subf %319, %326 : vector<1x1xf32>
      %328 = vector.broadcast %319 : vector<1x1xf32> to vector<8x8xf32>
      %329 = arith.cmpf oeq, %100, %328 : vector<8x8xf32>
      %330 = arith.extui %329 : vector<8x8xi1> to vector<8x8xi32>
      %331 = arith.sitofp %330 : vector<8x8xi32> to vector<8x8xf32>
      %332 = arith.addf %298, %331 : vector<8x8xf32>
      %333 = vector.broadcast %324 : vector<1x1xf32> to vector<8x8xf32>
      %334 = arith.cmpf oeq, %95, %333 : vector<8x8xf32>
      %335 = vector.broadcast %327 : vector<1x1xf32> to vector<8x8xf32>
      %336 = arith.cmpf oeq, %97, %335 : vector<8x8xf32>
      %337 = arith.ori %334, %336 : vector<8x8xi1>
      %cst_74 = arith.constant 1.000000e+09 : f32
      %338 = vector.broadcast %cst_74 : f32 to vector<8x8xf32>
      %339 = arith.select %337, %338, %305 : vector<8x8xi1>, vector<8x8xf32>
      %c7_i32 = arith.constant 7 : i32
      %340 = vector.shape_cast %339 : vector<8x8xf32> to vector<1x8x8xf32>
      %cst_75 = arith.constant dense<0x7F800000> : vector<1xf32>
      %341 = vector.multi_reduction <minimumf>, %340, %cst_75 [1, 2] : vector<1x8x8xf32> to vector<1xf32>
      %342 = vector.shape_cast %341 : vector<1xf32> to vector<1x1x1xf32>
      %343 = vector.extract %342[0, 0, 0] : f32 from vector<1x1x1xf32>
      %344 = vector.broadcast %343 : f32 to vector<1x1xf32>
      %345 = vector.broadcast %344 : vector<1x1xf32> to vector<8x8xf32>
      %346 = arith.cmpf oeq, %339, %345 : vector<8x8xf32>
      %347 = vector.broadcast %cst_43 : f32 to vector<8x8xf32>
      %348 = arith.select %346, %100, %347 : vector<8x8xi1>, vector<8x8xf32>
      %349 = vector.shape_cast %348 : vector<8x8xf32> to vector<1x8x8xf32>
      %cst_76 = arith.constant dense<0x7F800000> : vector<1xf32>
      %350 = vector.multi_reduction <minimumf>, %349, %cst_76 [1, 2] : vector<1x8x8xf32> to vector<1xf32>
      %351 = vector.shape_cast %350 : vector<1xf32> to vector<1x1x1xf32>
      %352 = vector.extract %351[0, 0, 0] : f32 from vector<1x1x1xf32>
      %353 = vector.broadcast %352 : f32 to vector<1x1xf32>
      %cst_77 = arith.constant 5.000000e-01 : f32
      %354 = vector.broadcast %cst_77 : f32 to vector<1x1xf32>
      %355 = arith.addf %353, %354 : vector<1x1xf32>
      %356 = vector.broadcast %cst_44 : f32 to vector<1x1xf32>
      %357 = arith.mulf %355, %356 : vector<1x1xf32>
      %358 = math.floor %357 : vector<1x1xf32>
      %359 = vector.broadcast %cst_45 : f32 to vector<1x1xf32>
      %360 = arith.mulf %358, %359 : vector<1x1xf32>
      %361 = arith.subf %353, %360 : vector<1x1xf32>
      %362 = vector.broadcast %353 : vector<1x1xf32> to vector<8x8xf32>
      %363 = arith.cmpf oeq, %100, %362 : vector<8x8xf32>
      %364 = arith.extui %363 : vector<8x8xi1> to vector<8x8xi32>
      %365 = arith.sitofp %364 : vector<8x8xi32> to vector<8x8xf32>
      %366 = arith.addf %332, %365 : vector<8x8xf32>
      %367 = vector.broadcast %358 : vector<1x1xf32> to vector<8x8xf32>
      %368 = arith.cmpf oeq, %95, %367 : vector<8x8xf32>
      %369 = vector.broadcast %361 : vector<1x1xf32> to vector<8x8xf32>
      %370 = arith.cmpf oeq, %97, %369 : vector<8x8xf32>
      %371 = arith.ori %368, %370 : vector<8x8xi1>
      %cst_78 = arith.constant 1.000000e+09 : f32
      %372 = vector.broadcast %cst_78 : f32 to vector<8x8xf32>
      %373 = arith.select %371, %372, %339 : vector<8x8xi1>, vector<8x8xf32>
      %374 = arith.mulf %366, %92 : vector<8x8xf32>
      %375 = vector.shape_cast %374 : vector<8x8xf32> to vector<1x8x8xf32>
      %cst_79 = arith.constant dense<0.000000e+00> : vector<1xf32>
      %376 = vector.multi_reduction <add>, %375, %cst_79 [1, 2] : vector<1x8x8xf32> to vector<1xf32>
      %377 = vector.shape_cast %376 : vector<1xf32> to vector<1x1x1xf32>
      %378 = vector.extract %377[0, 0, 0] : f32 from vector<1x1x1xf32>
      %cst_80 = arith.constant 1.250000e-01 : f32
      %379 = arith.mulf %378, %cst_80 : f32
      %380 = arith.mulf %366, %58 : vector<8x8xf32>
      %381 = vector.shape_cast %380 : vector<8x8xf32> to vector<1x8x8xf32>
      %cst_81 = arith.constant dense<0.000000e+00> : vector<1xf32>
      %382 = vector.multi_reduction <add>, %381, %cst_81 [1, 2] : vector<1x8x8xf32> to vector<1xf32>
      %383 = vector.shape_cast %382 : vector<1xf32> to vector<1x1x1xf32>
      %384 = vector.extract %383[0, 0, 0] : f32 from vector<1x1x1xf32>
      %cst_82 = arith.constant 1.250000e-01 : f32
      %385 = arith.mulf %384, %cst_82 : f32
      %386 = arith.mulf %366, %51 : vector<8x8xf32>
      %387 = vector.shape_cast %386 : vector<8x8xf32> to vector<1x8x8xf32>
      %cst_83 = arith.constant dense<0.000000e+00> : vector<1xf32>
      %388 = vector.multi_reduction <add>, %387, %cst_83 [1, 2] : vector<1x8x8xf32> to vector<1xf32>
      %389 = vector.shape_cast %388 : vector<1xf32> to vector<1x1x1xf32>
      %390 = vector.extract %389[0, 0, 0] : f32 from vector<1x1x1xf32>
      %cst_84 = arith.constant 1.250000e-01 : f32
      %391 = arith.mulf %390, %cst_84 : f32
      %392 = arith.mulf %366, %70 : vector<8x8xf32>
      %393 = vector.shape_cast %392 : vector<8x8xf32> to vector<1x8x8xf32>
      %cst_85 = arith.constant dense<0.000000e+00> : vector<1xf32>
      %394 = vector.multi_reduction <add>, %393, %cst_85 [1, 2] : vector<1x8x8xf32> to vector<1xf32>
      %395 = vector.shape_cast %394 : vector<1xf32> to vector<1x1x1xf32>
      %396 = vector.extract %395[0, 0, 0] : f32 from vector<1x1x1xf32>
      %cst_86 = arith.constant 1.250000e-01 : f32
      %397 = arith.mulf %396, %cst_86 : f32
      %398 = tpu.iota {dimensions = array<i32: 1>} : vector<1x128xi32>
      %c0_i32_87 = arith.constant 0 : i32
      %399 = vector.broadcast %c0_i32_87 : i32 to vector<1x128xi32>
      %400 = arith.cmpi eq, %398, %399 : vector<1x128xi32>
      %cst_88 = arith.constant 0.000000e+00 : f32
      %401 = vector.broadcast %379 : f32 to vector<1x128xf32>
      %402 = vector.broadcast %cst_88 : f32 to vector<1x128xf32>
      %403 = arith.select %400, %401, %402 : vector<1x128xi1>, vector<1x128xf32>
      %c1_i32_89 = arith.constant 1 : i32
      %404 = vector.broadcast %c1_i32_89 : i32 to vector<1x128xi32>
      %405 = arith.cmpi eq, %398, %404 : vector<1x128xi32>
      %cst_90 = arith.constant 0.000000e+00 : f32
      %406 = vector.broadcast %385 : f32 to vector<1x128xf32>
      %407 = vector.broadcast %cst_90 : f32 to vector<1x128xf32>
      %408 = arith.select %405, %406, %407 : vector<1x128xi1>, vector<1x128xf32>
      %409 = arith.addf %403, %408 : vector<1x128xf32>
      %c2_i32_91 = arith.constant 2 : i32
      %410 = vector.broadcast %c2_i32_91 : i32 to vector<1x128xi32>
      %411 = arith.cmpi eq, %398, %410 : vector<1x128xi32>
      %cst_92 = arith.constant 0.000000e+00 : f32
      %412 = vector.broadcast %391 : f32 to vector<1x128xf32>
      %413 = vector.broadcast %cst_92 : f32 to vector<1x128xf32>
      %414 = arith.select %411, %412, %413 : vector<1x128xi1>, vector<1x128xf32>
      %415 = arith.addf %409, %414 : vector<1x128xf32>
      %c3_i32_93 = arith.constant 3 : i32
      %416 = vector.broadcast %c3_i32_93 : i32 to vector<1x128xi32>
      %417 = arith.cmpi eq, %398, %416 : vector<1x128xi32>
      %cst_94 = arith.constant 0.000000e+00 : f32
      %418 = vector.broadcast %397 : f32 to vector<1x128xf32>
      %419 = vector.broadcast %cst_94 : f32 to vector<1x128xf32>
      %420 = arith.select %417, %418, %419 : vector<1x128xi1>, vector<1x128xf32>
      %421 = arith.addf %415, %420 : vector<1x128xf32>
      %c0_95 = arith.constant 0 : index
      %c0_96 = arith.constant 0 : index
      %c0_97 = arith.constant 0 : index
      %422 = vector.load %arg7[%c0_95, %c0_96, %c0_97] : memref<1x1x128xf32, #tpu.memory_space<vmem>>, vector<1x1x128xf32>
      %423 = vector.shape_cast %422 : vector<1x1x128xf32> to vector<1x128xf32>
      %424 = vector.shape_cast %421 : vector<1x128xf32> to vector<1x1x128xf32>
      tpu.vector_store %arg7[%c0_95, %c0_96, %c0_97], %424 {strides = array<i32>} : memref<1x1x128xf32, #tpu.memory_space<vmem>>, vector<1x1x128xf32>,
    } else {
    }
    return
  }
  func.func @transform_0(%arg0: i32, %arg1: i32) -> (i32, i32, i32) {
    %c0_i32 = arith.constant 0 : i32
    %c0_i32_0 = arith.constant 0 : i32
    return %arg0, %c0_i32, %arg1 : i32, i32, i32
  }
  func.func @transform_1(%arg0: i32, %arg1: i32) -> (i32, i32, i32) {
    %c0_i32 = arith.constant 0 : i32
    %c0_i32_0 = arith.constant 0 : i32
    return %arg0, %c0_i32, %arg1 : i32, i32, i32
  }
  func.func @transform_2(%arg0: i32, %arg1: i32) -> (i32, i32, i32) {
    %c0_i32 = arith.constant 0 : i32
    %c0_i32_0 = arith.constant 0 : i32
    %c0_i32_1 = arith.constant 0 : i32
    return %arg0, %c0_i32, %c0_i32_0 : i32, i32, i32
  }
  func.func @transform_3(%arg0: i32, %arg1: i32) -> (i32, i32, i32) {
    %c0_i32 = arith.constant 0 : i32
    %c0_i32_0 = arith.constant 0 : i32
    %c0_i32_1 = arith.constant 0 : i32
    return %arg0, %c0_i32, %c0_i32_0 : i32, i32, i32
  }
  func.func @transform_4(%arg0: i32, %arg1: i32) -> (i32, i32, i32) {
    %c0_i32 = arith.constant 0 : i32
    %c0_i32_0 = arith.constant 0 : i32
    %c0_i32_1 = arith.constant 0 : i32
    return %arg0, %c0_i32, %c0_i32_0 : i32, i32, i32
  }
  func.func @transform_5(%arg0: i32, %arg1: i32) -> (i32, i32, i32) {
    %c0_i32 = arith.constant 0 : i32
    %c0_i32_0 = arith.constant 0 : i32
    %c0_i32_1 = arith.constant 0 : i32
    return %arg0, %c0_i32, %c0_i32_0 : i32, i32, i32
  }
}

</mosaic_0001>

<bundles_post_ra>
// kernel: match_loss_forward.1
= control target key start
LH: loop header
LB: loop body
LE: loop exit
PB: predicated region body
PF: predicated region fallthrough
CT: control target
= control target key end

     0   :  { %s1270_s18 = smov 0   ;;  %s1272_s19 = smov 0   ;;  %s1451_s0 = inlined_call_operand.vmem [shape: bf16[2,8,256], index: 0, kind: input, shape index: {}]   ;;  %s1452_s1 = inlined_call_operand.vmem [shape: bf16[2,8,256], index: 1, kind: input, shape index: {}]   ;;  %s1453_s2 = inlined_call_operand.vmem [shape: f32[2,8,17], index: 2, kind: input, shape index: {}]   ;;  %s1454_s3 = inlined_call_operand.vmem [shape: f32[2,8,17], index: 3, kind: input, shape index: {}]   ;;  %s1455_s4 = inlined_call_operand.vmem [shape: f32[2,8,1], index: 4, kind: input, shape index: {}]   ;;  %s1456_s5 = inlined_call_operand.vmem [shape: f32[2,1,128], index: 5, kind: output, shape index: {}]  }
   0x1   :  { %s1274_s20 = smov 0  }
   0x2 LB: > { %s27_s21 = sadd.s32 1, %s1230_s19  ;;  %p1089_p0 = scmp.ge.s32.totalorder %s1234_s20, 1  ;;  %s1234_s20 = sphi %s1274_s20, %s15_s20   ;;  %s1230_s19 = sphi %s1272_s19, %s1458_s19   ;;  %s1226_s18 = sphi %s1270_s18, %s1457_s18  }
   0x3   : > { %p29_p1 = scmp.ge.s32.totalorder %s27_s21, 2  ;;  %p250_p2 = scmp.lt.s32.totalorder %s1234_s20, 3 }
   0x5   : > { %s1460_s21 = smov (%p29_p1, %s27_s21), 0  ;;  %p251_p3 = pnand %p1089_p0, %p250_p2 }
   0x6   : > { %p302_p4 = scmp.lt.s32.totalorder (!%p251_p3), %s1226_s18, 1 }
   0x7   : > { %254 = sbr.rel (%p251_p3) target bundleno = 3603 (0xe13), region = 40 }
   0xc   : > { %v1236_v0 = vmov 1.0   ;;  %s1462_s18 = smov (!%p302_p4, %s1226_s18), 1  ;;  %vm530_vm0 = vcmask 138240   ;;  %vm340_vm3 = vcmask 72704   ;;  %v1237_v9 = vmov 0.0  }
   0xd   : > { %392 = vmatpush.xpose.msra.mxu0 %v1236_v0  ;;  %424 = vmatpush.xpose.msra.mxu1 %v1236_v0  ;;  %s1291_s22 = sshll.u32 %s1462_s18, 3  ;;  %341 = vst.msk [vmem:[#allocation2] sm:$0xff] %vm340_vm3, %v1237_v9  ;;  %v1238_v10 = vmov 8   ;;  %vm345_vm4 = vcmask 65536   ;;  %vm618_vm13 = vcmask 64512  }
   0xe   : > { %1117 = vmatpush.xpose.msra.mxu2 %v1236_v0  ;;  %1119 = vmatpush.xpose.msra.mxu3 %v1236_v0  ;;  %s324_s25 = scalar_lea.vmem %s1453_s2, %s1291_s22  ;;  %s319_s28 = scalar_lea.vmem %s1452_s1, %s1291_s22  ;;  %342 = vst.msk [vmem:[#allocation2 + $0x8] sm:$0xff] %vm340_vm3, %v1237_v9 }
   0xf   : > { %v528_v1 = vld [vmem:[%s324_s25] sm:$0xff]  ;;  %s309_s6 = scalar_lea.vmem %s1451_s0, %s1291_s22  ;;  %343 = vst.msk [vmem:[#allocation2 + $0x10] sm:$0xff] %vm340_vm3, %v1237_v9  ;;  %1189 = vset.pattern.permute.xlu1 %v1238_v10  ;;  %1190 = vset.pattern.permute.xlu0 %v1238_v10  ;;  %s328_s9 = scalar_lea.vmem %s1454_s3, %s1291_s22 }
  0x10   : > { %v350_v2 = vld [vmem:[%s319_s28] sm:$0xff]  ;;  %v531_v3 = vsel %vm530_vm0, %v528_v1, -inf  ;;  %344 = vst.msk [vmem:[#allocation2 + $0x18] sm:$0xff] %vm340_vm3, %v1237_v9  ;;  %s332_s7 = scalar_lea.vmem %s1455_s4, %s1291_s22 }
  0x11   : > { %v351_v4 = vunpack.c.l.bf16 %v350_v2  ;;  %v352_v5 = vunpack.c.h.bf16 %v350_v2  ;;  %v347_v6 = vld [vmem:[%s309_s6] sm:$0xff]  ;;  %532 = vmax.xlane.f32.xlu0 %v531_v3  ;;  %346 = vst.msk [vmem:[#allocation2 + $0x20] sm:$0x1] %vm345_vm4, %v1237_v9 }
  0x12   : > { %v1306_v7 = vunpack.c.l.bf16 %v347_v6  ;;  %v1308_v8 = vunpack.c.h.bf16 %v347_v6  ;;  %v529_v32 = vld [vmem:[%s328_s9] sm:$0xff] }
  0x13   : > { %393 = vmatpush.xpose.msra.mxu0 %v351_v4  ;;  %425 = vmatpush.xpose.msra.mxu1 %v352_v5 }
  0x14   : > { %1118 = vmatpush.xpose.msra.mxu2 %v351_v4  ;;  %1120 = vmatpush.xpose.msra.mxu3 %v352_v5  ;;  %vm367_vm1 = vcmp.ge.f32.partialorder %v1306_v7, 0.5  ;;  %vm368_vm2 = vcmp.ge.f32.partialorder %v1308_v8, 0.5  ;;  %v373_v17 = vld [vmem:[#allocation2] sm:$0xff] }
  0x16   : > { %394 = vmatmul.f32.vlgmr.msra.gmra.mxu0 %v1306_v7  ;;  %426 = vmatmul.f32.vlgmr.msra.gmra.mxu1 %v1308_v8 }
  0x17   : > { %1099 = vmatmul.msk.f32.vlgmr.msra.gmra.mxu2 %vm367_vm1, %v1236_v0  ;;  %1100 = vmatmul.msk.f32.vlgmr.msra.gmra.mxu3 %vm368_vm2, %v1236_v0  ;;  %v376_v22 = vld [vmem:[#allocation2 + $0x18] sm:$0xff] }
  0x18   : > { %v377_v28 = vld [vmem:[#allocation2 + $0x20] sm:$0x1]  ;;  %1101 = vmatpush.xpose.msk.msrb.mxu2 %vm530_vm0, %v529_v32  ;;  %1103 = vmatpush.xpose.msk.msrb.mxu3 %vm530_vm0, %v529_v32 }
  0x1f   : > { %406 = vmatmul.f32.gmra.mxu2 %v1236_v0  ;;  %438 = vmatmul.f32.gmra.mxu3 %v1236_v0 }
  0x84   : > { %v533_v11 = vpop.xlane.xlu0 %532 }
  0x85   : > { %v534_v12 = vsub.f32 %v528_v1, %v533_v11 }
  0x87   : > { %v535_v13 = vmul.f32 1.442695, %v534_v12 }
  0x89   : > { %1194 = vpow2.f32 %v535_v13 }
  0x8f   : > { %v1195_v14 = vpop.eup %1194 }
  0x90   : > { %v537_v15 = vsel %vm530_vm0, %v1195_v14, 0.0 }
  0x91   : > { %538 = vadd.xlane.f32.xlu0 %v537_v15 }
  0x93   : > { %v395_v16 = vpop.f32.mrf.mxu0  ;;  %v427_v18 = vpop.f32.mrf.mxu1 }
  0x94   : > { %v428_v19 = vadd.f32 %v427_v18, %v395_v16  ;;  %v610_v16 = vlaneseq }
  0x96   : > { %v442_v20 = vadd.f32 %v428_v19, %v373_v17  ;;  %v611_v17 = vshrl.u32 %v610_v16, 7  ;;  %v1347_v19 = vand.u32 127, %v610_v16 }
  0x98   : > { %448 = vst.msk [vmem:[#allocation2] sm:$0xff] %vm340_vm3, %v442_v20  ;;  %v1345_v18 = vcvt.s32.f32 %v611_v17  ;;  %v1350_v20 = vcvt.s32.f32 %v1347_v19 }
  0x9a   : > { %v404_v21 = vpop.f32.mrf.mxu2  ;;  %v436_v23 = vpop.f32.mrf.mxu3 }
  0x9b   : > { %v437_v24 = vadd.f32 %v436_v23, %v404_v21  ;;  %v616_v21 = vmul.f32 8.0, %v1345_v18 }
  0x9d   : > { %v445_v25 = vadd.f32 %v437_v24, %v376_v22  ;;  %v1354_v22 = vadd.f32 %v616_v21, %v1350_v20 }
  0x9f   : > { %v457_v26 = vld [vmem:[#allocation2] sm:$0xff]  ;;  %451 = vst.msk [vmem:[#allocation2 + $0x18] sm:$0xff] %vm340_vm3, %v445_v25 }
  0xa0   : > { %466 = vperm.xlu1 %1189, %v457_v26   ;;  %v462_v60 = vmul.f32 2.0, %v457_v26 }
  0xa2   : > { %v407_v27 = vpop.f32.mrf.mxu2  ;;  %v439_v29 = vpop.f32.mrf.mxu3  ;;  %v463_v63 = vadd.f32 1.0, %v462_v60 }
  0xa3   : > { %v440_v30 = vadd.f32 %v439_v29, %v407_v27 }
  0xa5   : > { %v446_v31 = vadd.f32 %v440_v30, %v377_v28 }
  0xa7   : > { %453 = vst.msk [vmem:[#allocation2 + $0x20] sm:$0x1] %vm345_vm4, %v446_v31 }
  0xae   : > { %v1336_v48 = vld [vmem:[#allocation2 + $0x20] ss:$0 sm:$0xff] }
 0x104   : > { %v539_v33 = vpop.xlane.xlu0 %538 }
 0x105   : > { %1196 = vrcp.f32 %v539_v33  ;;  %v551_v39 = vand.u32 2147483648, %v539_v33  ;;  %v549_v42 = vand.u32 2147483647, %v539_v33  ;;  %vm545_vm6 = vweird.f32 %v539_v33 }
 0x106   : > { %1198 = vlog2.f32 %v539_v33 }
 0x107   : > { %v552_v44 = vor.u32 1.1754944e-38, %v551_v39  ;;  %vm550_vm8 = vcmp.eq.f32.partialorder %v549_v42, 8.507059e+37 }
 0x10b   : > { %v1197_v34 = vpop.eup %1196 }
 0x10c   : > { %v1199_v35 = vpop.eup %1198  ;;  %v541_v36 = vmul.f32 %v1197_v34, %v539_v33  ;;  %vm546_vm5 = vweird.f32 %v1197_v34 }
 0x10d   : > { %v556_v37 = vmul.f32 0.6931472, %v1199_v35  ;;  %vm547_vm7 = vmor %vm545_vm6, %vm546_vm5 }
 0x10e   : > { %v542_v38 = vsub.f32 1.0, %v541_v36 }
 0x10f   : > { %v557_v40 = vsub.f32 %v534_v12, %v556_v37 }
 0x110   : > { %v543_v41 = vmul.f32 %v1197_v34, %v542_v38 }
 0x111   : > { %1104 = vmatmul.msk.f32.vlgmr.msrb.gmra.mxu3 %vm530_vm0, %v557_v40 }
 0x112   : > { %v544_v43 = vadd.f32 %v1197_v34, %v543_v41  ;;  %v467_v49 = vpop.permute.xlu1 %466 }
 0x113   : > { %v470_v50 = vadd.f32 %v1336_v48, %v467_v49 }
 0x114   : > { %v548_v45 = vsel %vm547_vm7, %v1197_v34, %v544_v43 }
 0x115   : > { %v553_v46 = vsel %vm550_vm8, %v552_v44, %v548_v45  ;;  %v471_v51 = vadd.f32 1.0, %v470_v50 }
 0x116   : > { %v554_v47 = vmul.f32 %v1195_v14, %v553_v46 }
 0x117   : > { %1200 = vrcp.f32 %v471_v51  ;;  %vm477_vm9 = vweird.f32 %v471_v51  ;;  %v483_v56 = vand.u32 2147483648, %v471_v51  ;;  %v481_v58 = vand.u32 2147483647, %v471_v51 }
 0x118   : > { %1102 = vmatmul.msk.f32.vlgmr.msrb.gmra.mxu2 %vm530_vm0, %v554_v47  ;;  %1202 = vlog2.f32 %v1306_v7 }
 0x119   : > { %v484_v59 = vor.u32 1.1754944e-38, %v483_v56  ;;  %vm482_vm12 = vcmp.eq.f32.partialorder %v481_v58, 8.507059e+37  ;;  %1204 = vlog2.f32 %v1308_v8 }
 0x11d   : > { %v1201_v52 = vpop.eup %1200 }
 0x11e   : > { %v473_v53 = vmul.f32 %v1201_v52, %v471_v51  ;;  %vm478_vm10 = vweird.f32 %v1201_v52 }
 0x11f   : > { %vm479_vm11 = vmor %vm477_vm9, %vm478_vm10 }
 0x120   : > { %v474_v54 = vsub.f32 1.0, %v473_v53 }
 0x122   : > { %v475_v55 = vmul.f32 %v1201_v52, %v474_v54 }
 0x124   : > { %v476_v57 = vadd.f32 %v1201_v52, %v475_v55 }
 0x126   : > { %v480_v61 = vsel %vm479_vm11, %v1201_v52, %v476_v57 }
 0x127   : > { %v485_v62 = vsel %vm482_vm12, %v484_v59, %v480_v61 }
 0x128   : > { %v1339_v0 = vmul.f32 %v485_v62, %v463_v63 }
 0x12a   : > { %v487_v2 = vsub.f32 1.0, %v1339_v0 }
 0x19b   : > { %v581_v1 = vpop.f32.mrf.mxu2 }
 0x19c   : > { %v584_v3 = vsub.f32 0.0, %v581_v1 }
 0x19e   : > { %v609_v4 = vadd.f32 %v584_v3, %v487_v2 }
 0x1a0   : > { %v619_v5 = vsel %vm618_vm13, %v609_v4, inf }
 0x1a1   : > { %620 = vmin.xlane.f32.xlu1 %v619_v5 }
 0x214   : > { %v621_v6 = vpop.xlane.xlu1 %620 }
 0x215   : > { %v622_v10 = vrot.slane %v621_v6, 4 }
 0x217   : > { %v623_v11 = vmin.f32 %v621_v6, %v622_v10 }
 0x219   : > { %v624_v12 = vrot.slane %v623_v11, 2 }
 0x21b   : > { %v625_v13 = vmin.f32 %v623_v11, %v624_v12 }
 0x21d   : > { %v626_v14 = vrot.slane %v625_v13, 1 }
 0x21f   : > { %v627_v15 = vmin.f32 %v625_v13, %v626_v14 }
 0x221   : > { %1121 = vpush %v627_v15 }
 0x252   : > { %s1122_s10 = spop %1121 }
 0x253   : > { %v629_v23 = vstv %s1122_s10 }
 0x254   : > { %vm630_vm14 = vcmp.eq.f32.partialorder %v609_v4, %v629_v23 }
 0x255   : > { %v631_v24 = vsel %vm630_vm14, %v1354_v22, 64.0 }
 0x256   : > { %v632_v25 = vsel %vm618_vm13, %v631_v24, inf }
 0x257   : > { %633 = vmin.xlane.f32.xlu2 %v632_v25 }
 0x2ca   : > { %v634_v26 = vpop.xlane.xlu2 %633 }
 0x2cb   : > { %v635_v27 = vrot.slane %v634_v26, 4 }
 0x2cd   : > { %v636_v28 = vmin.f32 %v634_v26, %v635_v27 }
 0x2cf   : > { %v637_v29 = vrot.slane %v636_v28, 2 }
 0x2d1   : > { %v638_v30 = vmin.f32 %v636_v28, %v637_v29 }
 0x2d3   : > { %v639_v31 = vrot.slane %v638_v30, 1 }
 0x2d5   : > { %v640_v32 = vmin.f32 %v638_v30, %v639_v31 }
 0x2d7   : > { %1123 = vpush %v640_v32 }
 0x308   : > { %s1124_s11 = spop %1123 }
 0x309   : > { %v642_v33 = vstv %s1124_s11 }
 0x30a   : > { %v643_v34 = vadd.f32 0.5, %v642_v33  ;;  %vm648_vm4 = vcmp.eq.f32.partialorder %v1354_v22, %v642_v33 }
 0x30b   : > { %v1105_v61 = vsel %vm648_vm4, 1.0, %v1237_v9 }
 0x30c   : > { %v644_v35 = vmul.f32 0.125, %v643_v34 }
 0x30e   : > { %v645_v36 = vfloor.f32 %v644_v35 }
 0x310   : > { %v646_v37 = vmul.f32 8.0, %v645_v36  ;;  %vm652_vm15 = vcmp.eq.f32.partialorder %v1345_v18, %v645_v36 }
 0x312   : > { %v647_v38 = vsub.f32 %v642_v33, %v646_v37 }
 0x314   : > { %vm653_vm0 = vcmp.eq.f32.partialorder %v1350_v20, %v647_v38 }
 0x315   : > { %vm654_vm1 = vmor %vm652_vm15, %vm653_vm0 }
 0x316   : > { %v655_v39 = vsel %vm654_vm1, 1e+09, %v609_v4 }
 0x317   : > { %v656_v40 = vsel %vm618_vm13, %v655_v39, inf }
 0x318   : > { %657 = vmin.xlane.f32.xlu2 %v656_v40 }
 0x38b   : > { %v658_v41 = vpop.xlane.xlu2 %657 }
 0x38c   : > { %v659_v42 = vrot.slane %v658_v41, 4 }
 0x38e   : > { %v660_v43 = vmin.f32 %v658_v41, %v659_v42 }
 0x390   : > { %v661_v44 = vrot.slane %v660_v43, 2 }
 0x392   : > { %v662_v45 = vmin.f32 %v660_v43, %v661_v44 }
 0x394   : > { %v663_v46 = vrot.slane %v662_v45, 1 }
 0x396   : > { %v664_v47 = vmin.f32 %v662_v45, %v663_v46 }
 0x398   : > { %1125 = vpush %v664_v47 }
 0x3c9   : > { %s1126_s12 = spop %1125 }
 0x3ca   : > { %v666_v49 = vstv %s1126_s12 }
 0x3cb   : > { %vm667_vm2 = vcmp.eq.f32.partialorder %v655_v39, %v666_v49 }
 0x3cc   : > { %v668_v50 = vsel %vm667_vm2, %v1354_v22, 64.0 }
 0x3cd   : > { %v669_v51 = vsel %vm618_vm13, %v668_v50, inf }
 0x3ce   : > { %670 = vmin.xlane.f32.xlu0 %v669_v51 }
 0x441   : > { %v671_v52 = vpop.xlane.xlu0 %670 }
 0x442   : > { %v672_v53 = vrot.slane %v671_v52, 4 }
 0x444   : > { %v673_v54 = vmin.f32 %v671_v52, %v672_v53 }
 0x446   : > { %v674_v55 = vrot.slane %v673_v54, 2 }
 0x448   : > { %v675_v56 = vmin.f32 %v673_v54, %v674_v55 }
 0x44a   : > { %v676_v57 = vrot.slane %v675_v56, 1 }
 0x44c   : > { %v677_v58 = vmin.f32 %v675_v56, %v676_v57 }
 0x44e   : > { %1127 = vpush %v677_v58 }
 0x47f   : > { %s1128_s13 = spop %1127 }
 0x480   : > { %v679_v59 = vstv %s1128_s13 }
 0x481   : > { %v680_v60 = vadd.f32 0.5, %v679_v59  ;;  %vm685_vm5 = vcmp.eq.f32.partialorder %v1354_v22, %v679_v59 }
 0x482   : > { %v1106_v62 = vsel %vm685_vm5, 1.0, %v1237_v9 }
 0x483   : > { %v681_v63 = vmul.f32 0.125, %v680_v60  ;;  %v688_v1 = vadd.f32 %v1106_v62, %v1105_v61 }
 0x485   : > { %v682_v3 = vfloor.f32 %v681_v63 }
 0x487   : > { %v683_v4 = vmul.f32 8.0, %v682_v3  ;;  %vm689_vm6 = vcmp.eq.f32.partialorder %v1345_v18, %v682_v3 }
 0x489   : > { %v684_v5 = vsub.f32 %v679_v59, %v683_v4 }
 0x48b   : > { %vm690_vm7 = vcmp.eq.f32.partialorder %v1350_v20, %v684_v5 }
 0x48c   : > { %vm691_vm8 = vmor %vm689_vm6, %vm690_vm7 }
 0x48d   : > { %v692_v6 = vsel %vm691_vm8, 1e+09, %v655_v39 }
 0x48e   : > { %v693_v10 = vsel %vm618_vm13, %v692_v6, inf }
 0x48f   : > { %694 = vmin.xlane.f32.xlu2 %v693_v10 }
 0x502   : > { %v695_v11 = vpop.xlane.xlu2 %694 }
 0x503   : > { %v696_v12 = vrot.slane %v695_v11, 4 }
 0x505   : > { %v697_v13 = vmin.f32 %v695_v11, %v696_v12 }
 0x507   : > { %v698_v14 = vrot.slane %v697_v13, 2 }
 0x509   : > { %v699_v15 = vmin.f32 %v697_v13, %v698_v14 }
 0x50b   : > { %v700_v16 = vrot.slane %v699_v15, 1 }
 0x50d   : > { %v701_v17 = vmin.f32 %v699_v15, %v700_v16 }
 0x50f   : > { %1129 = vpush %v701_v17 }
 0x540   : > { %s1130_s14 = spop %1129 }
 0x541   : > { %v703_v21 = vstv %s1130_s14 }
 0x542   : > { %vm704_vm9 = vcmp.eq.f32.partialorder %v692_v6, %v703_v21 }
 0x543   : > { %v705_v23 = vsel %vm704_vm9, %v1354_v22, 64.0 }
 0x544   : > { %v706_v24 = vsel %vm618_vm13, %v705_v23, inf }
 0x545   : > { %707 = vmin.xlane.f32.xlu0 %v706_v24 }
 0x5b8   : > { %v708_v25 = vpop.xlane.xlu0 %707 }
 0x5b9   : > { %v709_v26 = vrot.slane %v708_v25, 4 }
 0x5bb   : > { %v710_v27 = vmin.f32 %v708_v25, %v709_v26 }
 0x5bd   : > { %v711_v28 = vrot.slane %v710_v27, 2 }
 0x5bf   : > { %v712_v29 = vmin.f32 %v710_v27, %v711_v28 }
 0x5c1   : > { %v713_v30 = vrot.slane %v712_v29, 1 }
 0x5c3   : > { %v714_v31 = vmin.f32 %v712_v29, %v713_v30 }
 0x5c5   : > { %1131 = vpush %v714_v31 }
 0x5f6   : > { %s1132_s15 = spop %1131 }
 0x5f7   : > { %v716_v32 = vstv %s1132_s15 }
 0x5f8   : > { %v717_v33 = vadd.f32 0.5, %v716_v32  ;;  %vm722_vm10 = vcmp.eq.f32.partialorder %v1354_v22, %v716_v32 }
 0x5f9   : > { %v1107_v34 = vsel %vm722_vm10, 1.0, %v1237_v9 }
 0x5fa   : > { %v718_v35 = vmul.f32 0.125, %v717_v33  ;;  %v725_v36 = vadd.f32 %v1107_v34, %v688_v1 }
 0x5fc   : > { %v719_v37 = vfloor.f32 %v718_v35 }
 0x5fe   : > { %v720_v38 = vmul.f32 8.0, %v719_v37  ;;  %vm726_vm11 = vcmp.eq.f32.partialorder %v1345_v18, %v719_v37 }
 0x600   : > { %v721_v39 = vsub.f32 %v716_v32, %v720_v38 }
 0x602   : > { %vm727_vm12 = vcmp.eq.f32.partialorder %v1350_v20, %v721_v39 }
 0x603   : > { %vm728_vm14 = vmor %vm726_vm11, %vm727_vm12 }
 0x604   : > { %v729_v40 = vsel %vm728_vm14, 1e+09, %v692_v6 }
 0x605   : > { %v730_v41 = vsel %vm618_vm13, %v729_v40, inf }
 0x606   : > { %731 = vmin.xlane.f32.xlu2 %v730_v41 }
 0x679   : > { %v732_v42 = vpop.xlane.xlu2 %731 }
 0x67a   : > { %v733_v43 = vrot.slane %v732_v42, 4 }
 0x67c   : > { %v734_v44 = vmin.f32 %v732_v42, %v733_v43 }
 0x67e   : > { %v735_v45 = vrot.slane %v734_v44, 2 }
 0x680   : > { %v736_v46 = vmin.f32 %v734_v44, %v735_v45 }
 0x682   : > { %v737_v47 = vrot.slane %v736_v46, 1 }
 0x684   : > { %v738_v49 = vmin.f32 %v736_v46, %v737_v47 }
 0x686   : > { %1133 = vpush %v738_v49 }
 0x6b7   : > { %s1134_s16 = spop %1133 }
 0x6b8   : > { %v740_v50 = vstv %s1134_s16 }
 0x6b9   : > { %vm741_vm15 = vcmp.eq.f32.partialorder %v729_v40, %v740_v50 }
 0x6ba   : > { %v742_v51 = vsel %vm741_vm15, %v1354_v22, 64.0 }
 0x6bb   : > { %v743_v52 = vsel %vm618_vm13, %v742_v51, inf }
 0x6bc   : > { %744 = vmin.xlane.f32.xlu0 %v743_v52 }
 0x72f   : > { %v745_v53 = vpop.xlane.xlu0 %744 }
 0x730   : > { %v746_v54 = vrot.slane %v745_v53, 4 }
 0x732   : > { %v747_v55 = vmin.f32 %v745_v53, %v746_v54 }
 0x734   : > { %v748_v56 = vrot.slane %v747_v55, 2 }
 0x736   : > { %v749_v57 = vmin.f32 %v747_v55, %v748_v56 }
 0x738   : > { %v750_v58 = vrot.slane %v749_v57, 1 }
 0x73a   : > { %v751_v59 = vmin.f32 %v749_v57, %v750_v58 }
 0x73c   : > { %1135 = vpush %v751_v59 }
 0x76d   : > { %s1136_s17 = spop %1135 }
 0x76e   : > { %v753_v60 = vstv %s1136_s17 }
 0x76f   : > { %v754_v61 = vadd.f32 0.5, %v753_v60  ;;  %vm759_vm0 = vcmp.eq.f32.partialorder %v1354_v22, %v753_v60 }
 0x770   : > { %v1108_v62 = vsel %vm759_vm0, 1.0, %v1237_v9 }
 0x771   : > { %v755_v63 = vmul.f32 0.125, %v754_v61  ;;  %v762_v1 = vadd.f32 %v1108_v62, %v725_v36 }
 0x773   : > { %v756_v3 = vfloor.f32 %v755_v63 }
 0x775   : > { %v757_v4 = vmul.f32 8.0, %v756_v3  ;;  %vm763_vm1 = vcmp.eq.f32.partialorder %v1345_v18, %v756_v3 }
 0x777   : > { %v758_v5 = vsub.f32 %v753_v60, %v757_v4 }
 0x779   : > { %vm764_vm2 = vcmp.eq.f32.partialorder %v1350_v20, %v758_v5 }
 0x77a   : > { %vm765_vm4 = vmor %vm763_vm1, %vm764_vm2 }
 0x77b   : > { %v766_v6 = vsel %vm765_vm4, 1e+09, %v729_v40 }
 0x77c   : > { %v767_v10 = vsel %vm618_vm13, %v766_v6, inf }
 0x77d   : > { %768 = vmin.xlane.f32.xlu2 %v767_v10 }
 0x7f0   : > { %v769_v11 = vpop.xlane.xlu2 %768 }
 0x7f1   : > { %v770_v12 = vrot.slane %v769_v11, 4 }
 0x7f3   : > { %v771_v13 = vmin.f32 %v769_v11, %v770_v12 }
 0x7f5   : > { %v772_v14 = vrot.slane %v771_v13, 2 }
 0x7f7   : > { %v773_v15 = vmin.f32 %v771_v13, %v772_v14 }
 0x7f9   : > { %v774_v16 = vrot.slane %v773_v15, 1 }
 0x7fb   : > { %v775_v17 = vmin.f32 %v773_v15, %v774_v16 }
 0x7fd   : > { %1137 = vpush %v775_v17 }
 0x82e   : > { %s1138_s23 = spop %1137 }
 0x82f   : > { %v777_v21 = vstv %s1138_s23  ;;  %s335_s23 = scalar_lea.vmem %s1456_s5, %s1462_s18 }
 0x830   : > { %vm778_vm5 = vcmp.eq.f32.partialorder %v766_v6, %v777_v21 }
 0x831   : > { %v779_v23 = vsel %vm778_vm5, %v1354_v22, 64.0 }
 0x832   : > { %v780_v24 = vsel %vm618_vm13, %v779_v23, inf }
 0x833   : > { %781 = vmin.xlane.f32.xlu0 %v780_v24 }
 0x8a6   : > { %v782_v25 = vpop.xlane.xlu0 %781 }
 0x8a7   : > { %v783_v26 = vrot.slane %v782_v25, 4 }
 0x8a9   : > { %v784_v27 = vmin.f32 %v782_v25, %v783_v26  ;;  %v1400_v25 = vld [vmem:[#allocation2 + $0x18] sm:$0xff] }
 0x8ab   : > { %v785_v28 = vrot.slane %v784_v27, 2 }
 0x8ad   : > { %v786_v29 = vmin.f32 %v784_v27, %v785_v28 }
 0x8af   : > { %v787_v30 = vrot.slane %v786_v29, 1 }
 0x8b1   : > { %v788_v31 = vmin.f32 %v786_v29, %v787_v30  ;;  %v1203_v29 = vpop.eup %1202 }
 0x8b3   : > { %1139 = vpush %v788_v31  ;;  %v1205_v31 = vpop.eup %1204 }
 0x8e4   : > { %s1140_s24 = spop %1139 }
 0x8e5   : > { %v790_v32 = vstv %s1140_s24 }
 0x8e6   : > { %v791_v33 = vadd.f32 0.5, %v790_v32  ;;  %vm796_vm6 = vcmp.eq.f32.partialorder %v1354_v22, %v790_v32 }
 0x8e7   : > { %v1109_v34 = vsel %vm796_vm6, 1.0, %v1237_v9 }
 0x8e8   : > { %v792_v35 = vmul.f32 0.125, %v791_v33  ;;  %v799_v36 = vadd.f32 %v1109_v34, %v762_v1  ;;  %v356_v34 = vmul.f32 0.6931472, %v1205_v31 }
 0x8ea   : > { %v793_v37 = vfloor.f32 %v792_v35 }
 0x8ec   : > { %v794_v38 = vmul.f32 8.0, %v793_v37  ;;  %vm800_vm7 = vcmp.eq.f32.partialorder %v1345_v18, %v793_v37  ;;  %v358_v37 = vmax.f32 %v356_v34, -100.0 }
 0x8ee   : > { %v795_v39 = vsub.f32 %v790_v32, %v794_v38  ;;  %v354_v32 = vmul.f32 0.6931472, %v1203_v29  ;;  %429 = vmatmul.f32.gmra.mxu1 %v358_v37 }
 0x8f0   : > { %vm801_vm8 = vcmp.eq.f32.partialorder %v1350_v20, %v795_v39  ;;  %v357_v35 = vmax.f32 %v354_v32, -100.0  ;;  %v359_v39 = vsub.f32 1.0, %v1306_v7 }
 0x8f1   : > { %vm802_vm9 = vmor %vm800_vm7, %vm801_vm8 }
 0x8f2   : > { %v803_v40 = vsel %vm802_vm9, 1e+09, %v766_v6  ;;  %397 = vmatmul.f32.gmra.mxu0 %v357_v35  ;;  %1206 = vlog2.f32 %v359_v39 }
 0x8f3   : > { %v804_v41 = vsel %vm618_vm13, %v803_v40, inf }
 0x8f4   : > { %805 = vmin.xlane.f32.xlu2 %v804_v41 }
 0x8f8   : > { %v1207_v41 = vpop.eup %1206 }
 0x967   : > { %v806_v42 = vpop.xlane.xlu2 %805 }
 0x968   : > { %v807_v43 = vrot.slane %v806_v42, 4 }
 0x96a   : > { %v808_v44 = vmin.f32 %v806_v42, %v807_v43  ;;  %v362_v43 = vmul.f32 0.6931472, %v1207_v41 }
 0x96c   : > { %v809_v45 = vrot.slane %v808_v44, 2 }
 0x96e   : > { %v810_v46 = vmin.f32 %v808_v44, %v809_v45  ;;  %v365_v45 = vmax.f32 %v362_v43, -100.0 }
 0x970   : > { %v811_v47 = vrot.slane %v810_v46, 1  ;;  %400 = vmatmul.f32.gmra.mxu0 %v365_v45 }
 0x972   : > { %v812_v49 = vmin.f32 %v810_v46, %v811_v47 }
 0x974   : > { %1141 = vpush %v812_v49 }
 0x9a5   : > { %s1142_s25 = spop %1141 }
 0x9a6   : > { %v814_v50 = vstv %s1142_s25 }
 0x9a7   : > { %vm815_vm10 = vcmp.eq.f32.partialorder %v803_v40, %v814_v50 }
 0x9a8   : > { %v816_v51 = vsel %vm815_vm10, %v1354_v22, 64.0 }
 0x9a9   : > { %v817_v52 = vsel %vm618_vm13, %v816_v51, inf }
 0x9aa   : > { %818 = vmin.xlane.f32.xlu0 %v817_v52 }
 0xa1d   : > { %v819_v53 = vpop.xlane.xlu0 %818 }
 0xa1e   : > { %v820_v54 = vrot.slane %v819_v53, 4 }
 0xa20   : > { %v821_v55 = vmin.f32 %v819_v53, %v820_v54 }
 0xa22   : > { %v822_v56 = vrot.slane %v821_v55, 2 }
 0xa24   : > { %v823_v57 = vmin.f32 %v821_v55, %v822_v56  ;;  %v398_v56 = vpop.f32.mrf.mxu0 }
 0xa26   : > { %v824_v58 = vrot.slane %v823_v57, 1 }
 0xa28   : > { %v825_v59 = vmin.f32 %v823_v57, %v824_v58  ;;  %v374_v57 = vld [vmem:[#allocation2 + $0x8] sm:$0xff]  ;;  %v430_v58 = vpop.f32.mrf.mxu1 }
 0xa2a   : > { %1143 = vpush %v825_v59  ;;  %v431_v59 = vadd.f32 %v430_v58, %v398_v56 }
 0xa5b   : > { %s1144_s26 = spop %1143 }
 0xa5c   : > { %v827_v60 = vstv %s1144_s26 }
 0xa5d   : > { %v828_v61 = vadd.f32 0.5, %v827_v60  ;;  %vm833_vm11 = vcmp.eq.f32.partialorder %v1354_v22, %v827_v60 }
 0xa5e   : > { %v1110_v62 = vsel %vm833_vm11, 1.0, %v1237_v9  ;;  %vm957_vm11 = vcmp.eq.s32.totalorder %v1347_v19, 1 }
 0xa5f   : > { %v829_v63 = vmul.f32 0.125, %v828_v61  ;;  %v836_v1 = vadd.f32 %v1110_v62, %v799_v36  ;;  %v401_v61 = vpop.f32.mrf.mxu0  ;;  %v375_v62 = vld [vmem:[#allocation2 + $0x10] sm:$0xff] }
 0xa61   : > { %v830_v3 = vfloor.f32 %v829_v63 }
 0xa63   : > { %v831_v4 = vmul.f32 8.0, %v830_v3  ;;  %vm837_vm12 = vcmp.eq.f32.partialorder %v1345_v18, %v830_v3 }
 0xa65   : > { %v832_v5 = vsub.f32 %v827_v60, %v831_v4  ;;  %v443_v60 = vadd.f32 %v431_v59, %v374_v57 }
 0xa67   : > { %vm838_vm14 = vcmp.eq.f32.partialorder %v1350_v20, %v832_v5  ;;  %449 = vst.msk [vmem:[#allocation2 + $0x8] sm:$0xff] %vm340_vm3, %v443_v60 }
 0xa68   : > { %vm839_vm15 = vmor %vm837_vm12, %vm838_vm14  ;;  %vm961_vm12 = vcmp.eq.s32.totalorder %v1347_v19, 2  ;;  %vm965_vm14 = vcmp.eq.s32.totalorder %v1347_v19, 3 }
 0xa69   : > { %v840_v6 = vsel %vm839_vm15, 1e+09, %v803_v40  ;;  %v360_v40 = vsub.f32 1.0, %v1308_v8 }
 0xa6a   : > { %v841_v10 = vsel %vm618_vm13, %v840_v6, inf }
 0xa6b   : > { %842 = vmin.xlane.f32.xlu2 %v841_v10  ;;  %1208 = vlog2.f32 %v360_v40 }
 0xa6e   : > { %v458_v37 = vld [vmem:[#allocation2 + $0x8] sm:$0xff] }
 0xa71   : > { %v1209_v42 = vpop.eup %1208 }
 0xa72   : > { %v364_v44 = vmul.f32 0.6931472, %v1209_v42 }
 0xa74   : > { %v366_v46 = vmax.f32 %v364_v44, -100.0 }
 0xa76   : > { %432 = vmatmul.f32.gmra.mxu1 %v366_v46 }
 0xade   : > { %v843_v11 = vpop.xlane.xlu2 %842 }
 0xadf   : > { %v844_v12 = vrot.slane %v843_v11, 4 }
 0xae1   : > { %v845_v13 = vmin.f32 %v843_v11, %v844_v12 }
 0xae3   : > { %v846_v14 = vrot.slane %v845_v13, 2 }
 0xae5   : > { %v847_v15 = vmin.f32 %v845_v13, %v846_v14  ;;  %v1239_v13 = vmov 0  }
 0xae6   : > { %1191 = vset.pattern.permute.xlu2 %v1239_v13 }
 0xae7   : > { %v848_v16 = vrot.slane %v847_v15, 1 }
 0xae9   : > { %v849_v17 = vmin.f32 %v847_v15, %v848_v16 }
 0xaeb   : > { %1145 = vpush %v849_v17  ;;  %v520_v17 = vld [vmem:[%s332_s7] sm:$0xff] }
 0xaf3   : > { %v433_v63 = vpop.f32.mrf.mxu1 }
 0xb1c   : > { %s1146_s27 = spop %1145 }
 0xb1d   : > { %v851_v21 = vstv %s1146_s27 }
 0xb1e   : > { %vm852_vm0 = vcmp.eq.f32.partialorder %v840_v6, %v851_v21 }
 0xb1f   : > { %v853_v23 = vsel %vm852_vm0, %v1354_v22, 64.0 }
 0xb20   : > { %v854_v24 = vsel %vm618_vm13, %v853_v23, inf }
 0xb21   : > { %855 = vmin.xlane.f32.xlu1 %v854_v24 }
 0xb3a   : > { %499 = vperm.xlu1 %1189, %v1400_v25  }
 0xb94   : > { %v856_v26 = vpop.xlane.xlu1 %855 }
 0xb95   : > { %v857_v27 = vrot.slane %v856_v26, 4 }
 0xb97   : > { %v858_v28 = vmin.f32 %v856_v26, %v857_v27 }
 0xb99   : > { %v859_v30 = vrot.slane %v858_v28, 2 }
 0xb9b   : > { %v860_v33 = vmin.f32 %v858_v28, %v859_v30 }
 0xb9d   : > { %v861_v36 = vrot.slane %v860_v33, 1 }
 0xb9f   : > { %v862_v38 = vmin.f32 %v860_v33, %v861_v36 }
 0xba1   : > { %1147 = vpush %v862_v38 }
 0xbac   : > { %v500_v30 = vpop.permute.xlu1 %499 }
 0xbad   : > { %v502_v31 = vadd.f32 %v1336_v48, %v500_v30 }
 0xbaf   : > { %v503_v32 = vsub.f32 %v502_v31, %v1400_v25 }
 0xbb1   : > { %v504_v33 = vadd.f32 1e-06, %v503_v32 }
 0xbb3   : > { %1210 = vrcp.f32 %v504_v33  ;;  %v516_v42 = vand.u32 2147483648, %v504_v33  ;;  %vm510_vm7 = vweird.f32 %v504_v33  ;;  %v514_v44 = vand.u32 2147483647, %v504_v33 }
 0xbb5   : > { %v517_v48 = vor.u32 1.1754944e-38, %v516_v42  ;;  %vm515_vm9 = vcmp.eq.f32.partialorder %v514_v44, 8.507059e+37 }
 0xbb9   : > { %v1211_v34 = vpop.eup %1210 }
 0xbba   : > { %v506_v35 = vmul.f32 %v1211_v34, %v504_v33 }
 0xbbc   : > { %v507_v36 = vsub.f32 1.0, %v506_v35 }
 0xbbe   : > { %v508_v38 = vmul.f32 %v1211_v34, %v507_v36 }
 0xbc0   : > { %v509_v41 = vadd.f32 %v1211_v34, %v508_v38 }
 0xbd2   : > { %s1148_s28 = spop %1147 }
 0xbd3   : > { %v864_v47 = vstv %s1148_s28 }
 0xbd4   : > { %v865_v49 = vadd.f32 0.5, %v864_v47  ;;  %vm870_vm1 = vcmp.eq.f32.partialorder %v1354_v22, %v864_v47 }
 0xbd5   : > { %v1111_v50 = vsel %vm870_vm1, 1.0, %v1237_v9 }
 0xbd6   : > { %v866_v7 = vmul.f32 0.125, %v865_v49  ;;  %v1409_v51 = vadd.f32 %v1111_v50, %v836_v1  ;;  %v434_v1 = vadd.f32 %v433_v63, %v401_v61 }
 0xbd8   : > { %v867_v8 = vfloor.f32 %v866_v7  ;;  %v444_v3 = vadd.f32 %v434_v1, %v375_v62 }
 0xbda   : > { %v868_v52 = vmul.f32 8.0, %v867_v8  ;;  %vm874_vm2 = vcmp.eq.f32.partialorder %v1345_v18, %v867_v8  ;;  %450 = vst.msk [vmem:[#allocation2 + $0x10] sm:$0xff] %vm340_vm3, %v444_v3  ;;  %vm511_vm3 = vweird.f32 %v1211_v34 }
 0xbdb   : > { %vm512_vm8 = vmor %vm510_vm7, %vm511_vm3 }
 0xbdc   : > { %v869_v53 = vsub.f32 %v864_v47, %v868_v52  ;;  %v513_v45 = vsel %vm512_vm8, %v1211_v34, %v509_v41  ;;  %v605_v47 = vpop.f32.mrf.mxu3 }
 0xbdd   : > { %v518_v49 = vsel %vm515_vm9, %v517_v48, %v513_v45  ;;  %v608_v52 = vsub.f32 0.0, %v605_v47 }
 0xbde   : > { %vm875_vm4 = vcmp.eq.f32.partialorder %v1350_v20, %v869_v53 }
 0xbdf   : > { %vm876_vm5 = vmor %vm874_vm2, %vm875_vm4 }
 0xbe0   : > { %v877_v54 = vsel %vm876_vm5, 1e+09, %v840_v6 }
 0xbe1   : > { %v878_v55 = vsel %vm618_vm13, %v877_v54, inf  ;;  %v459_v18 = vld [vmem:[#allocation2 + $0x10] sm:$0xff] }
 0xbe2   : > { %879 = vmin.xlane.f32.xlu0 %v878_v55  ;;  %v488_v39 = vsub.f32 %v458_v37, %v459_v18 }
 0xbf6   : > { %491 = vperm.xlu0 %1190, %v459_v18  }
 0xbfe   : > { %1192 = vset.pattern.permute.xlu0 %v1239_v13 }
 0xc55   : > { %v880_v20 = vpop.xlane.xlu0 %879 }
 0xc56   : > { %v881_v4 = vrot.slane %v880_v20, 4 }
 0xc58   : > { %v882_v5 = vmin.f32 %v880_v20, %v881_v4 }
 0xc5a   : > { %v883_v6 = vrot.slane %v882_v5, 2 }
 0xc5c   : > { %v884_v10 = vmin.f32 %v882_v5, %v883_v6 }
 0xc5e   : > { %v885_v11 = vrot.slane %v884_v10, 1 }
 0xc60   : > { %v886_v12 = vmin.f32 %v884_v10, %v885_v11 }
 0xc62   : > { %1149 = vpush %v886_v12 }
 0xc68   : > { %v492_v40 = vpop.permute.xlu0 %491 }
 0xc69   : > { %v494_v43 = vadd.f32 %v492_v40, %v488_v39 }
 0xc6b   : > { %v495_v46 = vsub.f32 0.0, %v494_v43 }
 0xc6d   : > { %v496_v53 = vmul.f32 0.00390625, %v495_v46 }
 0xc93   : > { %s1150_s29 = spop %1149 }
 0xc94   : > { %v888_v14 = vstv %s1150_s29 }
 0xc95   : > { %vm889_vm6 = vcmp.eq.f32.partialorder %v877_v54, %v888_v14  ;;  %v519_v54 = vmul.f32 %v518_v49, %v1400_v25 }
 0xc96   : > { %v890_v15 = vsel %vm889_vm6, %v1354_v22, 64.0 }
 0xc97   : > { %v891_v16 = vsel %vm618_vm13, %v890_v15, inf }
 0xc98   : > { %892 = vmin.xlane.f32.xlu2 %v891_v16 }
 0xcb0   : > { %523 = vperm.xlu2 %1191, %v520_v17  }
 0xd0b   : > { %v893_v21 = vpop.xlane.xlu2 %892 }
 0xd0c   : > { %v894_v23 = vrot.slane %v893_v21, 4 }
 0xd0e   : > { %v895_v24 = vmin.f32 %v893_v21, %v894_v23 }
 0xd10   : > { %v896_v26 = vrot.slane %v895_v24, 2 }
 0xd12   : > { %v897_v27 = vmin.f32 %v895_v24, %v896_v26 }
 0xd13   : > { %v524_v7 = vpop.permute.xlu2 %523 }
 0xd14   : > { %v898_v28 = vrot.slane %v897_v27, 1  ;;  %v526_v56 = vsub.f32 %v524_v7, %v519_v54 }
 0xd16   : > { %v899_v29 = vmin.f32 %v897_v27, %v898_v28 }
 0xd18   : > { %1151 = vpush %v899_v29 }
 0xd49   : > { %s1152_s22 = spop %1151 }
 0xd4a   : > { %v901_v50 = vstv %s1152_s22 }
 0xd4b   : > { %vm902_vm10 = vcmp.eq.f32.partialorder %v1354_v22, %v901_v50 }
 0xd4c   : > { %v1112_v8 = vsel %vm902_vm10, 1.0, %v1237_v9  ;;  %v527_v9 = vmul.f32 %v526_v56, %v526_v56 }
 0xd4d   : > { %v905_v55 = vadd.f32 %v1112_v8, %v1409_v51 }
 0xd4f   : > { %v906_v57 = vmul.f32 %v905_v55, %v608_v52  ;;  %v930_v58 = vmul.f32 %v905_v55, %v487_v2  ;;  %v918_v59 = vmul.f32 %v905_v55, %v496_v53  ;;  %v942_v62 = vmul.f32 %v905_v55, %v527_v9 }
 0xd51   : > { %v907_v60 = vsel %vm618_vm13, %v906_v57, 0.0  ;;  %v931_v61 = vsel %vm618_vm13, %v930_v58, 0.0  ;;  %v919_v22 = vsel %vm618_vm13, %v918_v59, 0.0  ;;  %v943_v25 = vsel %vm618_vm13, %v942_v62, 0.0 }
 0xd52   : > { %908 = vadd.xlane.f32.xlu1 %v907_v60  ;;  %932 = vadd.xlane.f32.xlu0 %v931_v61  ;;  %vm954_vm13 = vcmp.eq.s32.totalorder %v1347_v19, 0 }
 0xd53   : > { %920 = vadd.xlane.f32.xlu2 %v919_v22 }
 0xd5a   : > { %944 = vadd.xlane.f32.xlu1 %v943_v25 }
 0xdc5   : > { %v909_v51 = vpop.xlane.xlu1 %908  ;;  %v933_v63 = vpop.xlane.xlu0 %932 }
 0xdc6   : > { %v910_v1 = vrot.slane %v909_v51, 4  ;;  %v934_v0 = vrot.slane %v933_v63, 4  ;;  %v921_v2 = vpop.xlane.xlu2 %920 }
 0xdc7   : > { %v922_v3 = vrot.slane %v921_v2, 4 }
 0xdc8   : > { %v911_v18 = vadd.f32 %v910_v1, %v909_v51  ;;  %v935_v20 = vadd.f32 %v934_v0, %v933_v63 }
 0xdc9   : > { %v923_v4 = vadd.f32 %v922_v3, %v921_v2 }
 0xdca   : > { %v912_v5 = vrot.slane %v911_v18, 2  ;;  %v936_v6 = vrot.slane %v935_v20, 2 }
 0xdcb   : > { %v924_v10 = vrot.slane %v923_v4, 2 }
 0xdcc   : > { %v937_v11 = vadd.f32 %v936_v6, %v935_v20  ;;  %v913_v12 = vadd.f32 %v912_v5, %v911_v18 }
 0xdcd   : > { %v925_v13 = vadd.f32 %v924_v10, %v923_v4  ;;  %v945_v14 = vpop.xlane.xlu1 %944 }
 0xdce   : > { %v946_v15 = vrot.slane %v945_v14, 4  ;;  %v914_v16 = vrot.slane %v913_v12, 1  ;;  %v938_v17 = vrot.slane %v937_v11, 1 }
 0xdcf   : > { %v926_v21 = vrot.slane %v925_v13, 1 }
 0xdd0   : > { %v947_v23 = vadd.f32 %v946_v15, %v945_v14  ;;  %v915_v24 = vadd.f32 %v914_v16, %v913_v12  ;;  %v939_v26 = vadd.f32 %v938_v17, %v937_v11 }
 0xdd1   : > { %v927_v27 = vadd.f32 %v926_v21, %v925_v13 }
 0xdd2   : > { %v948_v28 = vrot.slane %v947_v23, 2  ;;  %1153 = vpush %v915_v24 }
 0xdd3   : > { %1155 = vpush %v927_v27 }
 0xdd4   : > { %v949_v29 = vadd.f32 %v948_v28, %v947_v23  ;;  %1157 = vpush %v939_v26 }
 0xdd6   : > { %v950_v30 = vrot.slane %v949_v29, 1 }
 0xdd8   : > { %v951_v31 = vadd.f32 %v950_v30, %v949_v29 }
 0xdda   : > { %1159 = vpush %v951_v31 }
 0xe03   : > { %s1154_s8 = spop %1153 }
 0xe04   : > { %s917_s9 = smul.f32 0.125, %s1154_s8  ;;  %s1156_s10 = spop %1155 }
 0xe05   : > { %s929_s11 = smul.f32 0.125, %s1156_s10  ;;  %s1158_s12 = spop %1157 }
 0xe06   : > { %v955_v32 = vstv %s917_s9  ;;  %s941_s13 = smul.f32 0.125, %s1158_s12 }
 0xe07   : > { %v956_v33 = vsel %vm954_vm13, %v955_v32, 0.0  ;;  %v958_v34 = vstv %s929_s11 }
 0xe08   : > { %v959_v35 = vsel %vm957_vm11, %v958_v34, 0.0  ;;  %v962_v37 = vstv %s941_s13 }
 0xe09   : > { %v960_v36 = vadd.f32 %v959_v35, %v956_v33  ;;  %v963_v38 = vsel %vm961_vm12, %v962_v37, 0.0 }
 0xe0b   : > { %s1160_s14 = spop %1159  ;;  %v964_v39 = vadd.f32 %v963_v38, %v960_v36 }
 0xe0c   : > { %s953_s15 = smul.f32 0.125, %s1160_s14 }
 0xe0e   : > { %v966_v40 = vstv %s953_s15 }
 0xe0f   : > { %v967_v41 = vsel %vm965_vm14, %v966_v40, 0.0 }
 0xe10   : > { %v968_v42 = vadd.f32 %v967_v41, %v964_v39 }
 0xe12   : > { %969 = vst [vmem:[%s335_s23] sm:$0x1] %v968_v42 }
 0xe13 PF: > { %s15_s20 = sadd.s32 1, %s1234_s20   ;;  %s1457_s18 = smov %s1230_s19 }
 0xe14   : > { %p12_p5 = scmp.ge.s32.totalorder %s15_s20, 4   ;;  %s1458_s19 = smov %s1460_s21 }
 0xe16   :  { %14 = sbr.rel (!%p12_p5) target bundleno = 2 (0x2), region = 90 }

</bundles_post_ra>
